<compile_context>
chip_gen: v7x
topology: tpu7x:2x2x1
jax: 0.10.0
libtpu: 0.0.40
codegen_flags: <defaults>
</compile_context>

<pallas_src>
import functools

import jax
import jax.numpy as jnp
from jax.experimental import pallas as pl
from jax.experimental.pallas import tpu as pltpu

EPS = 1e-8  # matches `eps = 1e-08` in the PyTorch file


@functools.lru_cache(maxsize=None)
def _vmem_limit_bytes():
    """Generation-aware VMEM cap (~60% of physical VMEM: v5e/v6e 128 MiB, v7x 64 MiB)."""
    try:
        cap = getattr(pltpu.get_tpu_info(), "vmem_capacity_bytes", None)
        if cap:
            return int(0.6 * int(cap))
    except Exception:
        pass
    return 48 * 1024 * 1024


def _pick_lane_tile(L, per_lane_bytes, budget_bytes):
    """Largest lane tile dividing L whose estimated VMEM footprint fits the budget."""
    for cand in (65536, 32768, 16384, 8192, 4096, 2048, 1024, 512, 256, 128):
        if L % cand == 0 and cand * per_lane_bytes <= budget_bytes:
            return cand
    return 128


# ----------------------------------------------------------------------------------
# Kernel 1: fused (folded-norm) 1x1-conv projections + cosine-similarity reduction
# ----------------------------------------------------------------------------------
def fused_backbone_cosine(images, gt_images, w_hat, b_hat, w_raw, b_raw, c3):
    """Per frame n, lane-chunk c, lane tile j:
         hat = W_hat' @ x_tile + b_hat'   (per-channel normalization folded into W'/b')
         raw = W_raw' @ g_tile + b_raw'
         accumulate sum(hat*raw), sum(hat^2), sum(raw^2) per channel in VMEM scratch,
         emit the f3 channel slice (rows [0, c3), bf16, lane-dense) for the mask head,
         and write per-(n, chunk) partial sums on the last inner tile.
       Wrapper reduces chunks and finalizes cos = dot / ((||hat||+eps)*(||raw||+eps)).
    Returns (f3_flat (c3, N*H*W) bf16, cos (N, Ctot) f32) with channels ordered [f3,f1,f2]."""
    N, Cin, H, W = images.shape
    L = H * W
    assert L % 128 == 0, "H*W must be a multiple of 128 (size_divisibility=32 implies this)"
    Ctot = w_hat.shape[0]

    # no dtype cast here -> no extra HBM round-trip; kernel casts per tile in VMEM
    x = images.reshape(N, Cin, L)
    g = gt_images.reshape(N, Cin, L)

    vmem_limit = _vmem_limit_bytes()
    in_bytes = x.dtype.itemsize
    # rough per-lane VMEM footprint: 2 streams x 2 DMA buffers of input, 2-buffer bf16 f3
    # output, hat/raw/product f32 intermediates
    per_lane = 4 * Cin * in_bytes + 4 * c3 + 16 * Ctot
    tL = _pick_lane_tile(L, per_lane, vmem_limit // 2)
    nj_total = L // tL
    # outer "parallel" lane-chunk axis: keeps v7x's 2nd TensorCore busy when N is 1-2
    n_chunks = 2 if (nj_total >= 2 and nj_total % 2 == 0) else 1
    nj_inner = nj_total // n_chunks

    def kernel(x_ref, g_ref, wh_ref, bh_ref, wr_ref, br_ref,
               f3_ref, dot_ref, h2_ref, r2_ref, dot_acc, h2_acc, r2_acc):
        j = pl.program_id(2)

        @pl.when(j == 0)
        def _():
            dot_acc[...] = jnp.zeros_like(dot_acc)
            h2_acc[...] = jnp.zeros_like(h2_acc)
            r2_acc[...] = jnp.zeros_like(r2_acc)

        xt = x_ref[0].astype(jnp.float32)                                 # (Cin, tL)
        gt = g_ref[0].astype(jnp.float32)
        hat = jnp.dot(wh_ref[...], xt, preferred_element_type=jnp.float32) + bh_ref[...]
        raw = jnp.dot(wr_ref[...], gt, preferred_element_type=jnp.float32) + br_ref[...]

        dot_acc[...] += jnp.sum(hat * raw, axis=1, keepdims=True)          # (Ctot, 1)
        h2_acc[...] += jnp.sum(hat * hat, axis=1, keepdims=True)
        r2_acc[...] += jnp.sum(raw * raw, axis=1, keepdims=True)

        # f3 rows are FIRST -> offset-0, tile-aligned slice feeding the bf16 store
        f3_ref[...] = hat[:c3, :].astype(f3_ref.dtype)

        # NOTE: correctness relies on j being the innermost "arbitrary" axis
        @pl.when(j == pl.num_programs(2) - 1)
        def _():
            dot_ref[0, 0] = dot_acc[...]
            h2_ref[0, 0] = h2_acc[...]
            r2_ref[0, 0] = r2_acc[...]

    stat_shape = jax.ShapeDtypeStruct((N, n_chunks, Ctot, 1), jnp.float32)
    stat_spec = pl.BlockSpec((1, 1, Ctot, 1), lambda n, c, j: (n, c, 0, 0))

    f3_flat, dot_p, h2_p, r2_p = pl.pallas_call(
        kernel,
        out_shape=(
            jax.ShapeDtypeStruct((c3, N * L), jnp.bfloat16),
            stat_shape, stat_shape, stat_shape,
        ),
        grid=(N, n_chunks, nj_inner),
        in_specs=[
            pl.BlockSpec((1, Cin, tL), lambda n, c, j: (n, 0, c * nj_inner + j)),
            pl.BlockSpec((1, Cin, tL), lambda n, c, j: (n, 0, c * nj_inner + j)),
            pl.BlockSpec((Ctot, Cin), lambda n, c, j: (0, 0)),
            pl.BlockSpec((Ctot, 1), lambda n, c, j: (0, 0)),
            pl.BlockSpec((Ctot, Cin), lambda n, c, j: (0, 0)),
            pl.BlockSpec((Ctot, 1), lambda n, c, j: (0, 0)),
        ],
        out_specs=(
            pl.BlockSpec((c3, tL), lambda n, c, j: (0, n * nj_total + c * nj_inner + j)),
            stat_spec, stat_spec, stat_spec,
        ),
        scratch_shapes=[
            pltpu.VMEM((Ctot, 1), jnp.float32),
            pltpu.VMEM((Ctot, 1), jnp.float32),
            pltpu.VMEM((Ctot, 1), jnp.float32),
        ],
        compiler_params=pltpu.CompilerParams(
            dimension_semantics=("parallel", "parallel", "arbitrary"),
            vmem_limit_bytes=vmem_limit,
        ),
    )(x, g, w_hat, b_hat, w_raw, b_raw)

    # reduce per-chunk partials (tiny) and finalize with the spec's eps semantics:
    #   cos = dot / ((||hat|| + eps) * (||raw|| + eps))
    dot = jnp.sum(dot_p, axis=1)[..., 0]            # (N, Ctot)
    h2 = jnp.sum(h2_p, axis=1)[..., 0]
    r2 = jnp.sum(r2_p, axis=1)[..., 0]
    cos = dot / ((jnp.sqrt(h2) + EPS) * (jnp.sqrt(r2) + EPS))
    return f3_flat, cos


# ----------------------------------------------------------------------------------
# Kernel 2: small-M matmul tiled along the output lane dim N (MXU, f32 accumulation)
# ----------------------------------------------------------------------------------
def _matmul_kernel(a_ref, b_ref, o_ref):
    o_ref[...] = jnp.dot(a_ref[...], b_ref[...],
                         preferred_element_type=jnp.float32).astype(o_ref.dtype)


def pallas_matmul(a, b, out_dtype=jnp.float32):
    """a: (M, K) @ b: (K, N) -> (M, N). Lane-tiled over N (up to 8192-wide tiles);
    pads N to a multiple of 128 if needed."""
    M, K = a.shape
    K2, N = b.shape
    assert K == K2

    tn = None
    for cand in (8192, 4096, 2048, 1024, 512, 256, 128):
        if N % cand == 0:
            tn = cand
            break
    if tn is None:
        n_eff = ((N + 127) // 128) * 128
        b = jnp.pad(b, ((0, 0), (0, n_eff - N)))
        tn = 128
        for cand in (8192, 4096, 2048, 1024, 512, 256):
            if n_eff % cand == 0:
                tn = cand
                break
    else:
        n_eff = N

    out = pl.pallas_call(
        _matmul_kernel,
        out_shape=jax.ShapeDtypeStruct((M, n_eff), out_dtype),
        grid=(n_eff // tn,),
        in_specs=[
            pl.BlockSpec((M, K), lambda j: (0, 0)),
            pl.BlockSpec((K, tn), lambda j: (0, j)),
        ],
        out_specs=pl.BlockSpec((M, tn), lambda j: (0, j)),
        compiler_params=pltpu.CompilerParams(
            dimension_semantics=("parallel",),
            vmem_limit_bytes=_vmem_limit_bytes(),
        ),
    )(a, b)
    return out[:, :N] if n_eff != N else out


# ----------------------------------------------------------------------------------
# Model glue (deterministic synthetic parameters; structural stand-ins for detectron2 parts)
# ----------------------------------------------------------------------------------
def init_params(key, C_in, feat_channels, num_queries, num_classes):
    ks = jax.random.split(key, 12)
    params = {}
    for i, (cf, k_h, k_r) in enumerate(zip(feat_channels, ks[0:3], ks[3:6]), start=1):
        params[f"w_hat{i}"] = (jax.random.normal(k_h, (cf, C_in)) / jnp.sqrt(C_in)).astype(jnp.float32)
        params[f"w_raw{i}"] = (jax.random.normal(k_r, (cf, C_in)) / jnp.sqrt(C_in)).astype(jnp.float32)
    D = feat_channels[-1]
    params["query_embed"] = (jax.random.normal(ks[6], (num_queries, D)) / jnp.sqrt(D)).astype(jnp.float32)
    params["class_w"] = (jax.random.normal(ks[7], (D, num_classes + 1)) / jnp.sqrt(D)).astype(jnp.float32)
    params["class_b"] = jnp.zeros((num_classes + 1,), jnp.float32)
    params["mask_w"] = (jax.random.normal(ks[8], (D, D)) / jnp.sqrt(D)).astype(jnp.float32)
    return params


def video_maskformer_forward(images, gt_images, params, pixel_mean, pixel_std,
                             num_queries, out_h, out_w, weight_dict, feat_channels):
    # TODO(synk): ImageList.from_tensors size-divisibility padding skipped (H, W already divisible).
    N, Cin, H, W = images.shape
    C1, C2, C3 = feat_channels

    # Fold per-channel normalization into the stacked projection weights:
    #   W' = W / std , b' = -W' @ mean   (so the normalize pass is removed entirely).
    # f3 rows are placed FIRST so the kernel's mask-head slice is offset-0 / tile-aligned.
    w_hat = jnp.concatenate([params["w_hat3"], params["w_hat1"], params["w_hat2"]], axis=0)
    w_raw = jnp.concatenate([params["w_raw3"], params["w_raw1"], params["w_raw2"]], axis=0)
    inv_std = 1.0 / pixel_std.reshape(1, Cin)
    w_hat_f = (w_hat * inv_std).astype(jnp.float32)
    w_raw_f = (w_raw * inv_std).astype(jnp.float32)
    mean_col = pixel_mean.reshape(Cin, 1).astype(jnp.float32)
    b_hat_f = -(w_hat_f @ mean_col)                      # (Ctot, 1)
    b_raw_f = -(w_raw_f @ mean_col)

    # --- backbone stub + fused cosine reductions (single Pallas kernel) ---
    # TODO(synk): real backbone (ResNet/Swin + learned compression) has no clean single
    # Pallas equivalent; stubbed with stacked 1x1-conv projections producing f{1,2,3}_{hat,raw}.
    f3_flat, cos = fused_backbone_cosine(images, gt_images, w_hat_f, b_hat_f,
                                         w_raw_f, b_raw_f, C3)

    # bpp from the forward (left-to-right // precedence kept to match the PyTorch line)
    bpp = jnp.asarray((H // 32) * W // 32 * 6 / (out_h * out_w), jnp.float32)

    # --- sem_seg_head stub: class head + mask embed, one tiny matmul -> plain jnp.dot ---
    # TODO(synk): full MSDeformAttn pixel decoder + transformer decoder not reproduced.
    q = params["query_embed"]                                              # (Q, D)
    num_classes_p1 = params["class_w"].shape[1]
    D = params["mask_w"].shape[1]
    w_head = jnp.concatenate([params["class_w"], params["mask_w"]], axis=1)  # (D, K+1+D)
    b_head = jnp.concatenate([params["class_b"], jnp.zeros((D,), jnp.float32)])
    head = q @ w_head + b_head[None, :]                                      # tiny: XLA MXU tile
    pred_logits = head[:, :num_classes_p1]
    mask_embed = head[:, num_classes_p1:]

    # mask matmul: bf16 MXU operands, f32 accumulation, bf16 writeback (largest HBM write)
    masks = pallas_matmul(mask_embed.astype(jnp.bfloat16), f3_flat, out_dtype=jnp.bfloat16)
    pred_masks = masks.reshape(num_queries, N, H, W)[None]                   # (1, Q, T, H, W)
    outputs = {"pred_logits": pred_logits[None], "pred_masks": pred_masks}

    # --- training-branch losses defined in this module ---
    # TODO(synk): VideoSetCriterion (Hungarian matcher + CE/mask/dice point losses) has no
    # clean Pallas equivalent; only loss_cosine / loss_bpp (defined in this forward) are computed.
    losses = {}
    sim_f3 = cos[:, :C3]                    # channel order is [f3, f1, f2]
    sim_f1 = cos[:, C3:C3 + C1]
    sim_f2 = cos[:, C3 + C1:]
    losses["loss_cosine"] = 1.0 + (jnp.mean(sim_f1) + jnp.mean(sim_f2) + jnp.mean(sim_f3)) / 3.0
    losses["loss_bpp"] = bpp

    for k in list(losses.keys()):
        if k in weight_dict:
            losses[k] = losses[k] * weight_dict[k]
        else:
            losses.pop(k)
    return losses, outputs


# ----------------------------------------------------------------------------------
if __name__ == "__main__":
    key = jax.random.PRNGKey(0)
    k_img, k_gt, k_par = jax.random.split(key, 3)

    # one video (B_vid=1) with num_frames=2 -> 2 images of shape (C=3, H=32, W=32)
    B_vid, num_frames, C, H, W = 1, 2, 3, 32, 32
    num_queries, num_classes = 8, 10
    feat_channels = (8, 16, 32)

    images = jax.random.uniform(k_img, (B_vid * num_frames, C, H, W), jnp.float32) * 255.0
    gt_images = jax.random.uniform(k_gt, (B_vid * num_frames, C, H, W), jnp.float32) * 255.0

    pixel_mean = jnp.array([123.675, 116.28, 103.53], jnp.float32)
    pixel_std = jnp.array([58.395, 57.12, 57.375], jnp.float32)

    weight_dict = {"loss_ce": 2.0, "loss_mask": 5.0, "loss_dice": 5.0,
                   "loss_cosine": 1.0, "loss_bpp": 0.1}

    params = init_params(k_par, C, feat_channels, num_queries, num_classes)

    losses, outputs = video_maskformer_forward(
        images, gt_images, params, pixel_mean, pixel_std,
        num_queries=num_queries, out_h=H, out_w=W, weight_dict=weight_dict,
        feat_channels=feat_channels)

    jax.block_until_ready((losses, outputs))
    assert outputs["pred_logits"].shape == (1, num_queries, num_classes + 1)
    assert outputs["pred_masks"].shape == (1, num_queries, num_frames, H, W)
    assert bool(jnp.isfinite(losses["loss_cosine"])) and bool(jnp.isfinite(losses["loss_bpp"]))
    print("KERNEL_OK")
</pallas_src>

<mosaic_0001>
module attributes {stable_mosaic.version = 11 : i64} {
  func.func @kernel(%arg0: i32, %arg1: i32, %arg2: i32, %arg3: memref<1x3x1024xf32, #tpu.memory_space<vmem>>, %arg4: memref<1x3x1024xf32, #tpu.memory_space<vmem>>, %arg5: memref<56x3xf32, #tpu.memory_space<vmem>>, %arg6: memref<56x1xf32, #tpu.memory_space<vmem>>, %arg7: memref<56x3xf32, #tpu.memory_space<vmem>>, %arg8: memref<56x1xf32, #tpu.memory_space<vmem>>, %arg9: memref<32x1024xbf16, #tpu.memory_space<vmem>>, %arg10: memref<1x1x56x1xf32, #tpu.memory_space<vmem>>, %arg11: memref<1x1x56x1xf32, #tpu.memory_space<vmem>>, %arg12: memref<1x1x56x1xf32, #tpu.memory_space<vmem>>, %arg13: memref<56x1xf32, #tpu.memory_space<vmem>>, %arg14: memref<56x1xf32, #tpu.memory_space<vmem>>, %arg15: memref<56x1xf32, #tpu.memory_space<vmem>>) attributes {dimension_semantics = [#tpu.dimension_semantics<parallel>, #tpu.dimension_semantics<parallel>, #tpu.dimension_semantics<arbitrary>], iteration_bounds = array<i64: 2, 1, 1>, scalar_prefetch = 0 : i64, scratch_operands = 3 : i64, tpu.core_type = #tpu.core_type<tc>, window_params = [{transform_indices = @transform_0, window_bounds = array<i64: 1, 3, 1024>}, {transform_indices = @transform_1, window_bounds = array<i64: 1, 3, 1024>}, {pipeline_mode = #tpu.pipeline_mode<synchronous>, transform_indices = @transform_2, window_bounds = array<i64: 56, 3>}, {pipeline_mode = #tpu.pipeline_mode<synchronous>, transform_indices = @transform_3, window_bounds = array<i64: 56, 1>}, {pipeline_mode = #tpu.pipeline_mode<synchronous>, transform_indices = @transform_4, window_bounds = array<i64: 56, 3>}, {pipeline_mode = #tpu.pipeline_mode<synchronous>, transform_indices = @transform_5, window_bounds = array<i64: 56, 1>}, {transform_indices = @transform_6, window_bounds = array<i64: 32, 1024>}, {transform_indices = @transform_7, window_bounds = array<i64: 1, 1, 56, 1>}, {transform_indices = @transform_8, window_bounds = array<i64: 1, 1, 56, 1>}, {transform_indices = @transform_9, window_bounds = array<i64: 1, 1, 56, 1>}]} {
    %c0_i32 = arith.constant 0 : i32
    %0 = arith.cmpi eq, %arg2, %c0_i32 : i32
    %1 = arith.extui %0 : i1 to i32
    %c0_i32_0 = arith.constant 0 : i32
    %2 = arith.cmpi ne, %1, %c0_i32_0 : i32
    scf.if %2 {
      %cst_34 = arith.constant 0.000000e+00 : f32
      %41 = vector.broadcast %cst_34 : f32 to vector<56x1xf32>
      %c0_35 = arith.constant 0 : index
      %c0_36 = arith.constant 0 : index
      %42 = vector.load %arg13[%c0_35, %c0_36] : memref<56x1xf32, #tpu.memory_space<vmem>>, vector<56x1xf32>
      tpu.vector_store %arg13[%c0_35, %c0_36], %41 {strides = array<i32>} : memref<56x1xf32, #tpu.memory_space<vmem>>, vector<56x1xf32>,
      %cst_37 = arith.constant 0.000000e+00 : f32
      %43 = vector.broadcast %cst_37 : f32 to vector<56x1xf32>
      %c0_38 = arith.constant 0 : index
      %c0_39 = arith.constant 0 : index
      %44 = vector.load %arg14[%c0_38, %c0_39] : memref<56x1xf32, #tpu.memory_space<vmem>>, vector<56x1xf32>
      tpu.vector_store %arg14[%c0_38, %c0_39], %43 {strides = array<i32>} : memref<56x1xf32, #tpu.memory_space<vmem>>, vector<56x1xf32>,
      %cst_40 = arith.constant 0.000000e+00 : f32
      %45 = vector.broadcast %cst_40 : f32 to vector<56x1xf32>
      %c0_41 = arith.constant 0 : index
      %c0_42 = arith.constant 0 : index
      %46 = vector.load %arg15[%c0_41, %c0_42] : memref<56x1xf32, #tpu.memory_space<vmem>>, vector<56x1xf32>
      tpu.vector_store %arg15[%c0_41, %c0_42], %45 {strides = array<i32>} : memref<56x1xf32, #tpu.memory_space<vmem>>, vector<56x1xf32>,
    } else {
    }
    %c0 = arith.constant 0 : index
    %c0_1 = arith.constant 0 : index
    %c0_2 = arith.constant 0 : index
    %3 = vector.load %arg3[%c0, %c0_1, %c0_2] : memref<1x3x1024xf32, #tpu.memory_space<vmem>>, vector<1x3x1024xf32>
    %4 = vector.shape_cast %3 : vector<1x3x1024xf32> to vector<3x1024xf32>
    %c0_3 = arith.constant 0 : index
    %c0_4 = arith.constant 0 : index
    %c0_5 = arith.constant 0 : index
    %5 = vector.load %arg4[%c0_3, %c0_4, %c0_5] : memref<1x3x1024xf32, #tpu.memory_space<vmem>>, vector<1x3x1024xf32>
    %6 = vector.shape_cast %5 : vector<1x3x1024xf32> to vector<3x1024xf32>
    %c0_6 = arith.constant 0 : index
    %c0_7 = arith.constant 0 : index
    %7 = vector.load %arg5[%c0_6, %c0_7] : memref<56x3xf32, #tpu.memory_space<vmem>>, vector<56x3xf32>
    %cst = arith.constant dense<0.000000e+00> : vector<56x1024xf32>
    %8 = tpu.matmul %7, %4, %cst {dimension_numbers = #tpu.dot_dimension_numbers<[1], [0], [0], [1], [0, 0, 1, 1], [], []>} : vector<56x3xf32>, vector<3x1024xf32>, vector<56x1024xf32> -> vector<56x1024xf32>
    %c0_8 = arith.constant 0 : index
    %c0_9 = arith.constant 0 : index
    %9 = vector.load %arg6[%c0_8, %c0_9] : memref<56x1xf32, #tpu.memory_space<vmem>>, vector<56x1xf32>
    %10 = vector.broadcast %9 : vector<56x1xf32> to vector<56x1024xf32>
    %11 = arith.addf %8, %10 : vector<56x1024xf32>
    %c0_10 = arith.constant 0 : index
    %c0_11 = arith.constant 0 : index
    %12 = vector.load %arg7[%c0_10, %c0_11] : memref<56x3xf32, #tpu.memory_space<vmem>>, vector<56x3xf32>
    %cst_12 = arith.constant dense<0.000000e+00> : vector<56x1024xf32>
    %13 = tpu.matmul %12, %6, %cst_12 {dimension_numbers = #tpu.dot_dimension_numbers<[1], [0], [0], [1], [0, 0, 1, 1], [], []>} : vector<56x3xf32>, vector<3x1024xf32>, vector<56x1024xf32> -> vector<56x1024xf32>
    %c0_13 = arith.constant 0 : index
    %c0_14 = arith.constant 0 : index
    %14 = vector.load %arg8[%c0_13, %c0_14] : memref<56x1xf32, #tpu.memory_space<vmem>>, vector<56x1xf32>
    %15 = vector.broadcast %14 : vector<56x1xf32> to vector<56x1024xf32>
    %16 = arith.addf %13, %15 : vector<56x1024xf32>
    %c0_15 = arith.constant 0 : index
    %c0_16 = arith.constant 0 : index
    %17 = vector.load %arg13[%c0_15, %c0_16] : memref<56x1xf32, #tpu.memory_space<vmem>>, vector<56x1xf32>
    %18 = arith.mulf %11, %16 : vector<56x1024xf32>
    %cst_17 = arith.constant dense<0.000000e+00> : vector<56xf32>
    %19 = vector.multi_reduction <add>, %18, %cst_17 [1] : vector<56x1024xf32> to vector<56xf32>
    %20 = vector.shape_cast %19 : vector<56xf32> to vector<56x1xf32>
    %21 = arith.addf %17, %20 : vector<56x1xf32>
    %c0_18 = arith.constant 0 : index
    %c0_19 = arith.constant 0 : index
    %22 = vector.load %arg13[%c0_18, %c0_19] : memref<56x1xf32, #tpu.memory_space<vmem>>, vector<56x1xf32>
    tpu.vector_store %arg13[%c0_18, %c0_19], %21 {strides = array<i32>} : memref<56x1xf32, #tpu.memory_space<vmem>>, vector<56x1xf32>,
    %c0_20 = arith.constant 0 : index
    %c0_21 = arith.constant 0 : index
    %23 = vector.load %arg14[%c0_20, %c0_21] : memref<56x1xf32, #tpu.memory_space<vmem>>, vector<56x1xf32>
    %24 = arith.mulf %11, %11 : vector<56x1024xf32>
    %cst_22 = arith.constant dense<0.000000e+00> : vector<56xf32>
    %25 = vector.multi_reduction <add>, %24, %cst_22 [1] : vector<56x1024xf32> to vector<56xf32>
    %26 = vector.shape_cast %25 : vector<56xf32> to vector<56x1xf32>
    %27 = arith.addf %23, %26 : vector<56x1xf32>
    %c0_23 = arith.constant 0 : index
    %c0_24 = arith.constant 0 : index
    %28 = vector.load %arg14[%c0_23, %c0_24] : memref<56x1xf32, #tpu.memory_space<vmem>>, vector<56x1xf32>
    tpu.vector_store %arg14[%c0_23, %c0_24], %27 {strides = array<i32>} : memref<56x1xf32, #tpu.memory_space<vmem>>, vector<56x1xf32>,
    %c0_25 = arith.constant 0 : index
    %c0_26 = arith.constant 0 : index
    %29 = vector.load %arg15[%c0_25, %c0_26] : memref<56x1xf32, #tpu.memory_space<vmem>>, vector<56x1xf32>
    %30 = arith.mulf %16, %16 : vector<56x1024xf32>
    %cst_27 = arith.constant dense<0.000000e+00> : vector<56xf32>
    %31 = vector.multi_reduction <add>, %30, %cst_27 [1] : vector<56x1024xf32> to vector<56xf32>
    %32 = vector.shape_cast %31 : vector<56xf32> to vector<56x1xf32>
    %33 = arith.addf %29, %32 : vector<56x1xf32>
    %c0_28 = arith.constant 0 : index
    %c0_29 = arith.constant 0 : index
    %34 = vector.load %arg15[%c0_28, %c0_29] : memref<56x1xf32, #tpu.memory_space<vmem>>, vector<56x1xf32>
    tpu.vector_store %arg15[%c0_28, %c0_29], %33 {strides = array<i32>} : memref<56x1xf32, #tpu.memory_space<vmem>>, vector<56x1xf32>,
    %35 = vector.extract_strided_slice %11 {offsets = [0, 0], sizes = [32, 1024], strides = [1, 1]} : vector<56x1024xf32> to vector<32x1024xf32>
    %36 = arith.truncf %35 : vector<32x1024xf32> to vector<32x1024xbf16>
    %c0_30 = arith.constant 0 : index
    %c0_31 = arith.constant 0 : index
    %37 = vector.load %arg9[%c0_30, %c0_31] : memref<32x1024xbf16, #tpu.memory_space<vmem>>, vector<32x1024xbf16>
    tpu.vector_store %arg9[%c0_30, %c0_31], %36 {strides = array<i32>} : memref<32x1024xbf16, #tpu.memory_space<vmem>>, vector<32x1024xbf16>,
    %c0_i32_32 = arith.constant 0 : i32
    %38 = arith.cmpi eq, %arg2, %c0_i32_32 : i32
    %39 = arith.extui %38 : i1 to i32
    %c0_i32_33 = arith.constant 0 : i32
    %40 = arith.cmpi ne, %39, %c0_i32_33 : i32
    scf.if %40 {
      %c0_34 = arith.constant 0 : index
      %c0_35 = arith.constant 0 : index
      %41 = vector.load %arg13[%c0_34, %c0_35] : memref<56x1xf32, #tpu.memory_space<vmem>>, vector<56x1xf32>
      %c0_36 = arith.constant 0 : index
      %c0_37 = arith.constant 0 : index
      %c0_38 = arith.constant 0 : index
      %c0_39 = arith.constant 0 : index
      %42 = vector.load %arg10[%c0_36, %c0_37, %c0_38, %c0_39] : memref<1x1x56x1xf32, #tpu.memory_space<vmem>>, vector<1x1x56x1xf32>
      %43 = vector.shape_cast %42 : vector<1x1x56x1xf32> to vector<56x1xf32>
      %44 = vector.shape_cast %41 : vector<56x1xf32> to vector<1x1x56x1xf32>
      tpu.vector_store %arg10[%c0_36, %c0_37, %c0_38, %c0_39], %44 {strides = array<i32>} : memref<1x1x56x1xf32, #tpu.memory_space<vmem>>, vector<1x1x56x1xf32>,
      %c0_40 = arith.constant 0 : index
      %c0_41 = arith.constant 0 : index
      %45 = vector.load %arg14[%c0_40, %c0_41] : memref<56x1xf32, #tpu.memory_space<vmem>>, vector<56x1xf32>
      %c0_42 = arith.constant 0 : index
      %c0_43 = arith.constant 0 : index
      %c0_44 = arith.constant 0 : index
      %c0_45 = arith.constant 0 : index
      %46 = vector.load %arg11[%c0_42, %c0_43, %c0_44, %c0_45] : memref<1x1x56x1xf32, #tpu.memory_space<vmem>>, vector<1x1x56x1xf32>
      %47 = vector.shape_cast %46 : vector<1x1x56x1xf32> to vector<56x1xf32>
      %48 = vector.shape_cast %45 : vector<56x1xf32> to vector<1x1x56x1xf32>
      tpu.vector_store %arg11[%c0_42, %c0_43, %c0_44, %c0_45], %48 {strides = array<i32>} : memref<1x1x56x1xf32, #tpu.memory_space<vmem>>, vector<1x1x56x1xf32>,
      %c0_46 = arith.constant 0 : index
      %c0_47 = arith.constant 0 : index
      %49 = vector.load %arg15[%c0_46, %c0_47] : memref<56x1xf32, #tpu.memory_space<vmem>>, vector<56x1xf32>
      %c0_48 = arith.constant 0 : index
      %c0_49 = arith.constant 0 : index
      %c0_50 = arith.constant 0 : index
      %c0_51 = arith.constant 0 : index
      %50 = vector.load %arg12[%c0_48, %c0_49, %c0_50, %c0_51] : memref<1x1x56x1xf32, #tpu.memory_space<vmem>>, vector<1x1x56x1xf32>
      %51 = vector.shape_cast %50 : vector<1x1x56x1xf32> to vector<56x1xf32>
      %52 = vector.shape_cast %49 : vector<56x1xf32> to vector<1x1x56x1xf32>
      tpu.vector_store %arg12[%c0_48, %c0_49, %c0_50, %c0_51], %52 {strides = array<i32>} : memref<1x1x56x1xf32, #tpu.memory_space<vmem>>, vector<1x1x56x1xf32>,
    } else {
    }
    return
  }
  func.func @transform_0(%arg0: i32, %arg1: i32, %arg2: i32) -> (i32, i32, i32) {
    %c1_i32 = arith.constant 1 : i32
    %0 = arith.muli %arg1, %c1_i32 : i32
    %1 = arith.addi %0, %arg2 : i32
    %c0_i32 = arith.constant 0 : i32
    %c0_i32_0 = arith.constant 0 : i32
    return %arg0, %c0_i32, %1 : i32, i32, i32
  }
  func.func @transform_1(%arg0: i32, %arg1: i32, %arg2: i32) -> (i32, i32, i32) {
    %c1_i32 = arith.constant 1 : i32
    %0 = arith.muli %arg1, %c1_i32 : i32
    %1 = arith.addi %0, %arg2 : i32
    %c0_i32 = arith.constant 0 : i32
    %c0_i32_0 = arith.constant 0 : i32
    return %arg0, %c0_i32, %1 : i32, i32, i32
  }
  func.func @transform_2(%arg0: i32, %arg1: i32, %arg2: i32) -> (i32, i32) {
    %c0_i32 = arith.constant 0 : i32
    %c0_i32_0 = arith.constant 0 : i32
    %c0_i32_1 = arith.constant 0 : i32
    return %c0_i32, %c0_i32_0 : i32, i32
  }
  func.func @transform_3(%arg0: i32, %arg1: i32, %arg2: i32) -> (i32, i32) {
    %c0_i32 = arith.constant 0 : i32
    %c0_i32_0 = arith.constant 0 : i32
    %c0_i32_1 = arith.constant 0 : i32
    return %c0_i32, %c0_i32_0 : i32, i32
  }
  func.func @transform_4(%arg0: i32, %arg1: i32, %arg2: i32) -> (i32, i32) {
    %c0_i32 = arith.constant 0 : i32
    %c0_i32_0 = arith.constant 0 : i32
    %c0_i32_1 = arith.constant 0 : i32
    return %c0_i32, %c0_i32_0 : i32, i32
  }
  func.func @transform_5(%arg0: i32, %arg1: i32, %arg2: i32) -> (i32, i32) {
    %c0_i32 = arith.constant 0 : i32
    %c0_i32_0 = arith.constant 0 : i32
    %c0_i32_1 = arith.constant 0 : i32
    return %c0_i32, %c0_i32_0 : i32, i32
  }
  func.func @transform_6(%arg0: i32, %arg1: i32, %arg2: i32) -> (i32, i32) {
    %c1_i32 = arith.constant 1 : i32
    %0 = arith.muli %arg0, %c1_i32 : i32
    %c1_i32_0 = arith.constant 1 : i32
    %1 = arith.muli %arg1, %c1_i32_0 : i32
    %2 = arith.addi %0, %1 : i32
    %3 = arith.addi %2, %arg2 : i32
    %c0_i32 = arith.constant 0 : i32
    %c0_i32_1 = arith.constant 0 : i32
    return %c0_i32, %3 : i32, i32
  }
  func.func @transform_7(%arg0: i32, %arg1: i32, %arg2: i32) -> (i32, i32, i32, i32) {
    %c0_i32 = arith.constant 0 : i32
    %c0_i32_0 = arith.constant 0 : i32
    %c0_i32_1 = arith.constant 0 : i32
    return %arg0, %arg1, %c0_i32, %c0_i32_0 : i32, i32, i32, i32
  }
  func.func @transform_8(%arg0: i32, %arg1: i32, %arg2: i32) -> (i32, i32, i32, i32) {
    %c0_i32 = arith.constant 0 : i32
    %c0_i32_0 = arith.constant 0 : i32
    %c0_i32_1 = arith.constant 0 : i32
    return %arg0, %arg1, %c0_i32, %c0_i32_0 : i32, i32, i32, i32
  }
  func.func @transform_9(%arg0: i32, %arg1: i32, %arg2: i32) -> (i32, i32, i32, i32) {
    %c0_i32 = arith.constant 0 : i32
    %c0_i32_0 = arith.constant 0 : i32
    %c0_i32_1 = arith.constant 0 : i32
    return %arg0, %arg1, %c0_i32, %c0_i32_0 : i32, i32, i32, i32
  }
}

</mosaic_0001>

<bundles_post_ra>
// kernel: tpu_custom_call.1
= control target key start
LH: loop header
LB: loop body
LE: loop exit
PB: predicated region body
PF: predicated region fallthrough
CT: control target
= control target key end

     0   :  { %15 = vsyncpa [#allocation6], 0  ;;  %s3818_s0 = inlined_call_operand.vmem [shape: f32[2,3,1024], index: 0, kind: input, shape index: {}]   ;;  %s3819_s1 = inlined_call_operand.vmem [shape: f32[2,3,1024], index: 1, kind: input, shape index: {}]   ;;  %s3820_s2 = inlined_call_operand.vmem [shape: f32[56,3], index: 2, kind: input, shape index: {}]   ;;  %s3821_s3 = inlined_call_operand.vmem [shape: f32[56,1], index: 3, kind: input, shape index: {}]   ;;  %s3822_s4 = inlined_call_operand.vmem [shape: f32[56,3], index: 4, kind: input, shape index: {}]   ;;  %s3823_s5 = inlined_call_operand.vmem [shape: f32[56,1], index: 5, kind: input, shape index: {}]   ;;  %s3824_s6 = inlined_call_operand.hbm [shape: bf16[32,2048], index: 6, kind: output, shape index: {0}]   ;;  %s3825_s7 = inlined_call_operand.vmem [shape: f32[2,1,56,1], index: 7, kind: output, shape index: {1}]   ;;  %s3826_s8 = inlined_call_operand.vmem [shape: f32[2,1,56,1], index: 8, kind: output, shape index: {2}]   ;;  %s3827_s9 = inlined_call_operand.vmem [shape: f32[2,1,56,1], index: 9, kind: output, shape index: {3}]  }
   0x1   :  { %17 = vsyncpa [#allocation6 + $0x1], 0  ;;  %s2754_s30 = smov 0   ;;  %s2756_s10 = smov 0  }
   0x2   :  { %s2758_s11 = smov 0   ;;  %s2760_s12 = smov 0  }
   0x3   :  { %s2762_s13 = smov 0   ;;  %s2764_s14 = smov 0  }
   0x4 LB: > { %s2422_s15 = sadd.s32 4294967295, %s2696_s14   ;;  %s2423_s16 = sadd.s32 4294967294, %s2696_s14   ;;  %s2696_s14 = sphi %s2764_s14, %s23_s14   ;;  %s2692_s13 = sphi %s2762_s13, %s3894_s13   ;;  %s2688_s12 = sphi %s2760_s12, %s3893_s12   ;;  %s2684_s11 = sphi %s2758_s11, %s3892_s11   ;;  %s2680_s10 = sphi %s2756_s10, %s3891_s10   ;;  %s2676_s30 = sphi %s2754_s30, %s3890_s30  }
   0x5   : > { %s42_s17 = sadd.s32 1, %s2692_s13  ;;  %s197_s18 = sadd.s32 1, %s2684_s11 }
   0x6   : > { %p44_p0 = scmp.ge.s32.totalorder %s42_s17, 2  ;;  %p207_p1 = scmp.ne.s32.totalorder %s2684_s11, %s2680_s10 }
   0x7   : > { %p208_p2 = scmp.eq.s32.totalorder %s2422_s15, 1  ;;  %p213_p3 = scmp.ne.s32.totalorder %s2680_s10, %s2676_s30 }
   0x8   : > { %s3896_s17 = smov (%p44_p0, %s42_s17), 0  ;;  %p214_p5 = scmp.eq.s32.totalorder %s2423_s16, 1 }
   0x9   : > { %3848 = sst [smem:[#allocation8_spill]] %s3896_s17  ;;  %p2794_p4 = por %p208_p2, %p207_p1 }
   0xa   : > { %s194_s20 = ssub.s32 %s2692_s13, %s3896_s17  ;;  %p2426_p6 = scmp.ge.s32.totalorder %s2696_s14, 1 }
   0xb   : > { %p195_p7 = scmp.eq.s32.totalorder %s194_s20, 0  ;;  %p2801_p8 = por %p214_p5, %p213_p3 }
   0xc   : > { %p358_p9 = scmp.lt.s32.totalorder %s2696_s14, 3 }
   0xd   : > { %s2807_s22 = scalar_select %p195_p7, %s2684_s11, %s197_s18  }
   0xe   : > { %p359_p10 = pnand %p2426_p6, %p358_p9 }
  0x10   : > { %362 = sbr.rel (%p359_p10) target bundleno = 535 (0x217), region = 44 }
  0x17   : > { %p438_p11 = scmp.lt.s32.totalorder %s2688_s12, 1  ;;  %v2698_v0 = vmov 0.0   ;;  %v2699_v1 = vmov 0   ;;  %vm603_vm0 = vcmask 1042432   ;;  %v531_v2 = vld [vmem:[%s3821_s3] sm:$0xff]  ;;  %v533_v3 = vld [vmem:[%s3821_s3 + $0x10] sm:$0xff] }
  0x18   : > { %684 = vmatprep.mubr.f32.mxu0 %v2698_v0  ;;  %791 = vmatprep.mubr.f32.mxu1 %v2698_v0  ;;  %v2836_v11 = vld [vmem:[%s3820_s2] sm:$0xff]  ;;  %vm581_vm1 = vcmask 23552   ;;  %v2856_v16 = vld [vmem:[%s3820_s2 + $0x8] sm:$0xff]  ;;  %v534_v19 = vld [vmem:[%s3821_s3 + $0x18] sm:$0xff]  ;;  %vm494_vm2 = vcmask 7168   ;;  %s2546_s26 = sshll.u32 %s2688_s12, 9 }
  0x19   : > { %s2813_s23 = scalar_select %p438_p11, %s2688_s12, 1  ;;  %2608 = vset.pattern.permute.xlu0 %v2699_v1  ;;  %2609 = vset.pattern.permute.xlu1 %v2699_v1  ;;  %v532_v18 = vld [vmem:[%s3821_s3 + $0x8] sm:$0xff]  ;;  %v2879_v20 = vld [vmem:[%s3820_s2 + $0x10] sm:$0xff]  ;;  %v535_v21 = vld [vmem:[%s3821_s3 + $0x20] sm:$0xff]  ;;  %502 = vst.msk [vmem:[#allocation3] sm:$0xff] %vm494_vm2, %v2698_v0 }
  0x1a   : > { %540 = vperm.xlu0 %2608, %v531_v2   ;;  %550 = vperm.xlu1 %2609, %v533_v3   ;;  %v536_v22 = vld [vmem:[%s3821_s3 + $0x28] sm:$0xff]  ;;  %v527_v23 = vld [vmem:[%s3820_s2 + $0x18] sm:$0xff]  ;;  %v537_v24 = vld [vmem:[%s3821_s3 + $0x30] sm:$0xff]  ;;  %495 = vst.msk [vmem:[#allocation2] sm:$0xff] %vm494_vm2, %v2698_v0  ;;  %s3682_s16 = scalar_lea.hbm %s3824_s6, %s2546_s26  ;;  %s2700_s12 = smov [#allocation5]  }
  0x1b   : > { %s2528_s24 = sshll.u32 %s2813_s23, 5  ;;  %v1055_v25 = vld [vmem:[%s3823_s5] sm:$0xff]  ;;  %v1056_v27 = vld [vmem:[%s3823_s5 + $0x8] sm:$0xff]  ;;  %v1057_v28 = vld [vmem:[%s3823_s5 + $0x10] sm:$0xff]  ;;  %496 = vst.msk [vmem:[#allocation2 + $0x8] sm:$0xff] %vm494_vm2, %v2698_v0  ;;  %s2622_s20 = sshll.u32 %s2700_s12, 4  ;;  %s2623_s20 = int_to_ptr.vmem [resolvable:$false] %s2622_s20 }
  0x1c   : > { %s445_s27 = scalar_lea.vmem %s3818_s0, %s2528_s24  ;;  %s2822_s15 = scalar_lea.vmem %s3819_s1, %s2528_s24  ;;  %v528_v26 = vld [vmem:[%s3820_s2 + $0x20] sm:$0xff]  ;;  %v529_v29 = vld [vmem:[%s3820_s2 + $0x28] sm:$0xff]  ;;  %v1058_v30 = vld [vmem:[%s3823_s5 + $0x18] sm:$0xff]  ;;  %497 = vst.msk [vmem:[#allocation2 + $0x10] sm:$0xff] %vm494_vm2, %v2698_v0 }
  0x1d   : > { %v516_v4 = vld [vmem:[%s445_s27] sm:$0x77]  ;;  %v517_v5 = vld [vmem:[%s445_s27 + $0x8] sm:$0x77]  ;;  %v518_v6 = vld [vmem:[%s445_s27 + $0x10] sm:$0x77] }
  0x1e   : > { %v577_v7 = vcombine.high %v516_v4, %v516_v4  ;;  %v578_v8 = vcombine.high %v517_v5, %v517_v5  ;;  %v519_v9 = vld [vmem:[%s445_s27 + $0x18] sm:$0x77]  ;;  %v2831_v10 = vld [vmem:[%s2822_s15] sm:$0x77]  ;;  %v579_v12 = vcombine.high %v518_v6, %v518_v6  ;;  %v2845_v15 = vld [vmem:[%s2822_s15 + $0x8] sm:$0x77]  ;;  %545 = vperm.xlu0 %2608, %v532_v18   ;;  %555 = vperm.xlu1 %2609, %v534_v19  }
  0x1f   : > { %v580_v13 = vcombine.high %v519_v9, %v519_v9  ;;  %v1101_v14 = vcombine.high %v2831_v10, %v2831_v10  ;;  %v1102_v17 = vcombine.high %v2845_v15, %v2845_v15  ;;  %v1059_v31 = vld [vmem:[%s3823_s5 + $0x20] sm:$0xff]  ;;  %v530_v32 = vld [vmem:[%s3820_s2 + $0x30] sm:$0xff]  ;;  %v523_v34 = vld [vmem:[%s2822_s15 + $0x18] sm:$0x77]  ;;  %s400_s24 = sand.u32 1, %s2680_s10   ;;  %498 = vst.msk [vmem:[#allocation2 + $0x18] sm:$0xff] %vm494_vm2, %v2698_v0 }
  0x20   : > { %2435 = vmatprep.subr.msk.mxu0 %vm603_vm0, %v577_v7  ;;  %2444 = vmatprep.subr.msk.mxu1 %vm603_vm0, %v578_v8  ;;  %v522_v33 = vld [vmem:[%s2822_s15 + $0x10] sm:$0x77]  ;;  %v1060_v35 = vld [vmem:[%s3823_s5 + $0x28] sm:$0xff]  ;;  %v1104_v38 = vcombine.high %v523_v34, %v523_v34  ;;  %v1048_v39 = vld [vmem:[%s3822_s4] sm:$0xff]  ;;  %s2427_s25 = sshll.u32 %s400_s24, 7  ;;  %499 = vst.msk [vmem:[#allocation2 + $0x20] sm:$0xff] %vm494_vm2, %v2698_v0 }
  0x21   : > { %2436 = vmatpush1.msk.msra.mxu0 %vm603_vm0, %v516_v4  ;;  %2445 = vmatpush1.msk.msra.mxu1 %vm603_vm0, %v517_v5  ;;  %v1061_v36 = vld [vmem:[%s3823_s5 + $0x30] sm:$0xff]  ;;  %v1103_v37 = vcombine.high %v522_v33, %v522_v33  ;;  %v1049_v40 = vld [vmem:[%s3822_s4 + $0x8] sm:$0xff]  ;;  %v1051_v42 = vld [vmem:[%s3822_s4 + $0x18] sm:$0xff]  ;;  %s3103_s17 = scalar_lea.vmem [#allocation5], %s2427_s25  ;;  %500 = vst.msk [vmem:[#allocation2 + $0x28] sm:$0xff] %vm494_vm2, %v2698_v0  ;;  %s3688_s15 = scalar_lea.sflag [#allocation6], %s400_s24 }
  0x22   : > { %2437 = vmatmul.mubr.msk.f32.vlgmr.msra.gmra.mrb[0].mxu0 %vm581_vm1, %v2836_v11  ;;  %2446 = vmatmul.mubr.msk.f32.vlgmr.msra.gmra.mrb[0].mxu1 %vm581_vm1, %v2836_v11  ;;  %v1050_v41 = vld [vmem:[%s3822_s4 + $0x10] sm:$0xff]  ;;  %v1052_v43 = vld [vmem:[%s3822_s4 + $0x20] sm:$0xff]  ;;  %v1053_v44 = vld [vmem:[%s3822_s4 + $0x28] sm:$0xff]  ;;  %501 = vst.msk [vmem:[#allocation2 + $0x30] sm:$0xff] %vm494_vm2, %v2698_v0  ;;  %s2191_s27 = sshll.u32 %s3103_s17, 4  ;;  %s2624_s25 = scalar_lea.vmem %s2623_s20, 4096  ;;  %s3684_s27 = int_to_ptr.vmem [resolvable:$true] %s2191_s27 }
  0x23   : > { %2453 = vmatprep.subr.msk.mxu0 %vm603_vm0, %v579_v12  ;;  %690 = vmatprep.mubr.f32.mxu0 %v2698_v0  ;;  %v1054_v45 = vld [vmem:[%s3822_s4 + $0x30] sm:$0xff]  ;;  %503 = vst.msk [vmem:[#allocation3 + $0x8] sm:$0xff] %vm494_vm2, %v2698_v0  ;;  %504 = vst.msk [vmem:[#allocation3 + $0x10] sm:$0xff] %vm494_vm2, %v2698_v0  ;;  %s2618_s18 = scalar_lea.vmem %s3684_s27, 2048  ;;  %p2625_p1 = scmp.lt.s32.totalorder %s3684_s27, %s2623_s20 }
  0x24   : > { %2454 = vmatpush1.msk.msra.mxu0 %vm603_vm0, %v518_v6  ;;  %797 = vmatprep.mubr.f32.mxu1 %v2698_v0  ;;  %505 = vst.msk [vmem:[#allocation3 + $0x18] sm:$0xff] %vm494_vm2, %v2698_v0  ;;  %506 = vst.msk [vmem:[#allocation3 + $0x20] sm:$0xff] %vm494_vm2, %v2698_v0  ;;  %p2619_p12 = scmp.ne.s32.totalorder %s3684_s27, %s2618_s18  ;;  %p2626_p2 = scmp.lt.s32.totalorder %s2624_s25, %s2618_s18 }
  0x25   : > { %2462 = vmatprep.subr.msk.mxu1 %vm603_vm0, %v580_v13  ;;  %2471 = vmatprep.subr.msk.mxu0 %vm603_vm0, %v1101_v14  ;;  %507 = vst.msk [vmem:[#allocation3 + $0x28] sm:$0xff] %vm494_vm2, %v2698_v0  ;;  %508 = vst.msk [vmem:[#allocation3 + $0x30] sm:$0xff] %vm494_vm2, %v2698_v0 }
  0x26   : > { %2438 = vmatmul.mubr.msk.f32.gmra.mrb[2].mxu0 %vm581_vm1, %v2856_v16  ;;  %2447 = vmatmul.mubr.msk.f32.gmra.mrb[2].mxu1 %vm581_vm1, %v2856_v16  ;;  %509 = vst.msk [vmem:[#allocation4] sm:$0xff] %vm494_vm2, %v2698_v0  ;;  %510 = vst.msk [vmem:[#allocation4 + $0x8] sm:$0xff] %vm494_vm2, %v2698_v0  ;;  %p2620_p13 = pnand %p2619_p12, %p2794_p4  ;;  %p2627_p3 = por %p2626_p2, %p2625_p1 }
  0x27   : > { %2463 = vmatpush1.msk.msra.mxu1 %vm603_vm0, %v519_v9  ;;  %696 = vmatprep.mubr.f32.mxu0 %v2698_v0  ;;  %511 = vst.msk [vmem:[#allocation4 + $0x10] sm:$0xff] %vm494_vm2, %v2698_v0  ;;  %512 = vst.msk [vmem:[#allocation4 + $0x18] sm:$0xff] %vm494_vm2, %v2698_v0 }
  0x28   : > { %803 = vmatprep.mubr.f32.mxu1 %v2698_v0  ;;  %2480 = vmatprep.subr.msk.mxu1 %vm603_vm0, %v1102_v17  ;;  %513 = vst.msk [vmem:[#allocation4 + $0x20] sm:$0xff] %vm494_vm2, %v2698_v0  ;;  %514 = vst.msk [vmem:[#allocation4 + $0x28] sm:$0xff] %vm494_vm2, %v2698_v0  ;;  %p2621_p0 = pneg %p2620_p13 }
  0x29   : > { %560 = vperm.xlu0 %2608, %v535_v21   ;;  %565 = vperm.xlu1 %2609, %v536_v22   ;;  %515 = vst.msk [vmem:[#allocation4 + $0x30] sm:$0xff] %vm494_vm2, %v2698_v0 }
  0x2a   : > { %2439 = vmatmul.mubr.msk.f32.gmra.mrb[4].mxu0 %vm581_vm1, %v2879_v20  ;;  %2448 = vmatmul.mubr.msk.f32.gmra.mrb[4].mxu1 %vm581_vm1, %v2879_v20  ;;  %p2628_p5 = pnand %p2627_p3, %p2621_p0 }
  0x2b   : > { %702 = vmatprep.mubr.f32.mxu0 %v2698_v0  ;;  %809 = vmatprep.mubr.f32.mxu1 %v2698_v0 }
  0x2d   : > { %570 = vperm.xlu0 %2608, %v537_v24   ;;  %1064 = vperm.xlu1 %2609, %v1055_v25  }
  0x2e   : > { %2440 = vmatmul.mubr.msk.f32.gmra.mrb[6].mxu0 %vm581_vm1, %v527_v23  ;;  %2449 = vmatmul.mubr.msk.f32.gmra.mrb[6].mxu1 %vm581_vm1, %v527_v23 }
  0x2f   : > { %708 = vmatprep.mubr.f32.mxu0 %v2698_v0  ;;  %815 = vmatprep.mubr.f32.mxu1 %v2698_v0 }
  0x31   : > { %1069 = vperm.xlu0 %2608, %v1056_v27   ;;  %1074 = vperm.xlu1 %2609, %v1057_v28  }
  0x32   : > { %2441 = vmatmul.mubr.msk.f32.gmra.mrb[8].mxu0 %vm581_vm1, %v528_v26  ;;  %2450 = vmatmul.mubr.msk.f32.gmra.mrb[8].mxu1 %vm581_vm1, %v528_v26 }
  0x33   : > { %714 = vmatprep.mubr.f32.mxu0 %v2698_v0  ;;  %821 = vmatprep.mubr.f32.mxu1 %v2698_v0 }
  0x35   : > { %1079 = vperm.xlu0 %2608, %v1058_v30   ;;  %1084 = vperm.xlu1 %2609, %v1059_v31  }
  0x36   : > { %2442 = vmatmul.mubr.msk.f32.gmra.mrb[10].mxu0 %vm581_vm1, %v529_v29  ;;  %2451 = vmatmul.mubr.msk.f32.gmra.mrb[10].mxu1 %vm581_vm1, %v529_v29 }
  0x37   : > { %720 = vmatprep.mubr.f32.mxu0 %v2698_v0  ;;  %827 = vmatprep.mubr.f32.mxu1 %v2698_v0 }
  0x39   : > { %1089 = vperm.xlu0 %2608, %v1060_v35   ;;  %1094 = vperm.xlu1 %2609, %v1061_v36  }
  0x3a   : > { %2443 = vmatmul.mubr.msk.f32.gmra.mrb[12].mxu0 %vm581_vm1, %v530_v32  ;;  %2452 = vmatmul.mubr.msk.f32.gmra.mrb[12].mxu1 %vm581_vm1, %v530_v32 }
  0x3b   : > { %898 = vmatprep.mubr.f32.mxu0 %v2698_v0  ;;  %1005 = vmatprep.mubr.f32.mxu1 %v2698_v0 }
  0x3e   : > { %2455 = vmatmul.mubr.msk.f32.vlgmr.msra.gmra.mrb[14].mxu0 %vm581_vm1, %v2836_v11  ;;  %2464 = vmatmul.mubr.msk.f32.vlgmr.msra.gmra.mrb[14].mxu1 %vm581_vm1, %v2836_v11 }
  0x3f   : > { %2472 = vmatpush1.msk.msra.mxu0 %vm603_vm0, %v2831_v10  ;;  %904 = vmatprep.mubr.f32.mxu0 %v2698_v0 }
  0x40   : > { %1011 = vmatprep.mubr.f32.mxu1 %v2698_v0  ;;  %2481 = vmatpush1.msk.msra.mxu1 %vm603_vm0, %v2845_v15 }
  0x41   : > { %2489 = vmatprep.subr.msk.mxu0 %vm603_vm0, %v1103_v37  ;;  %2498 = vmatprep.subr.msk.mxu1 %vm603_vm0, %v1104_v38 }
  0x42   : > { %2456 = vmatmul.mubr.msk.f32.gmra.mrb[16].mxu0 %vm581_vm1, %v2856_v16  ;;  %2465 = vmatmul.mubr.msk.f32.gmra.mrb[16].mxu1 %vm581_vm1, %v2856_v16 }
  0x43   : > { %910 = vmatprep.mubr.f32.mxu0 %v2698_v0  ;;  %1017 = vmatprep.mubr.f32.mxu1 %v2698_v0 }
  0x46   : > { %2457 = vmatmul.mubr.msk.f32.gmra.mrb[18].mxu0 %vm581_vm1, %v2879_v20  ;;  %2466 = vmatmul.mubr.msk.f32.gmra.mrb[18].mxu1 %vm581_vm1, %v2879_v20 }
  0x47   : > { %916 = vmatprep.mubr.f32.mxu0 %v2698_v0  ;;  %1023 = vmatprep.mubr.f32.mxu1 %v2698_v0 }
  0x4a   : > { %2458 = vmatmul.mubr.msk.f32.gmra.mrb[20].mxu0 %vm581_vm1, %v527_v23  ;;  %2467 = vmatmul.mubr.msk.f32.gmra.mrb[20].mxu1 %vm581_vm1, %v527_v23 }
  0x4b   : > { %922 = vmatprep.mubr.f32.mxu0 %v2698_v0  ;;  %1029 = vmatprep.mubr.f32.mxu1 %v2698_v0 }
  0x4e   : > { %2459 = vmatmul.mubr.msk.f32.gmra.mrb[22].mxu0 %vm581_vm1, %v528_v26  ;;  %2468 = vmatmul.mubr.msk.f32.gmra.mrb[22].mxu1 %vm581_vm1, %v528_v26 }
  0x4f   : > { %928 = vmatprep.mubr.f32.mxu0 %v2698_v0  ;;  %1035 = vmatprep.mubr.f32.mxu1 %v2698_v0 }
  0x52   : > { %2460 = vmatmul.mubr.msk.f32.gmra.mrb[24].mxu0 %vm581_vm1, %v529_v29  ;;  %2469 = vmatmul.mubr.msk.f32.gmra.mrb[24].mxu1 %vm581_vm1, %v529_v29 }
  0x53   : > { %934 = vmatprep.mubr.f32.mxu0 %v2698_v0  ;;  %1041 = vmatprep.mubr.f32.mxu1 %v2698_v0 }
  0x56   : > { %2461 = vmatmul.mubr.msk.f32.gmra.mrb[26].mxu0 %vm581_vm1, %v530_v32  ;;  %2470 = vmatmul.mubr.msk.f32.gmra.mrb[26].mxu1 %vm581_vm1, %v530_v32 }
  0x57   : > { %1206 = vmatprep.mubr.f32.mxu0 %v2698_v0  ;;  %1313 = vmatprep.mubr.f32.mxu1 %v2698_v0 }
  0x5a   : > { %2473 = vmatmul.mubr.msk.f32.vlgmr.msra.gmra.mrb[28].mxu0 %vm581_vm1, %v1048_v39  ;;  %2482 = vmatmul.mubr.msk.f32.vlgmr.msra.gmra.mrb[28].mxu1 %vm581_vm1, %v1048_v39 }
  0x5b   : > { %2490 = vmatpush1.msk.msra.mxu0 %vm603_vm0, %v522_v33  ;;  %1212 = vmatprep.mubr.f32.mxu0 %v2698_v0 }
  0x5c   : > { %1319 = vmatprep.mubr.f32.mxu1 %v2698_v0  ;;  %2499 = vmatpush1.msk.msra.mxu1 %vm603_vm0, %v523_v34 }
  0x5e   : > { %2474 = vmatmul.mubr.msk.f32.gmra.mrb[30].mxu0 %vm581_vm1, %v1049_v40  ;;  %2483 = vmatmul.mubr.msk.f32.gmra.mrb[30].mxu1 %vm581_vm1, %v1049_v40 }
  0x5f   : > { %1218 = vmatprep.mubr.f32.mxu0 %v2698_v0  ;;  %1325 = vmatprep.mubr.f32.mxu1 %v2698_v0 }
  0x62   : > { %2475 = vmatmul.mubr.msk.f32.gmra.mrb[32].mxu0 %vm581_vm1, %v1050_v41  ;;  %2484 = vmatmul.mubr.msk.f32.gmra.mrb[32].mxu1 %vm581_vm1, %v1050_v41 }
  0x63   : > { %1224 = vmatprep.mubr.f32.mxu0 %v2698_v0  ;;  %1331 = vmatprep.mubr.f32.mxu1 %v2698_v0 }
  0x66   : > { %2476 = vmatmul.mubr.msk.f32.gmra.mrb[34].mxu0 %vm581_vm1, %v1051_v42  ;;  %2485 = vmatmul.mubr.msk.f32.gmra.mrb[34].mxu1 %vm581_vm1, %v1051_v42 }
  0x67   : > { %1230 = vmatprep.mubr.f32.mxu0 %v2698_v0  ;;  %1337 = vmatprep.mubr.f32.mxu1 %v2698_v0 }
  0x6a   : > { %2477 = vmatmul.mubr.msk.f32.gmra.mrb[36].mxu0 %vm581_vm1, %v1052_v43  ;;  %2486 = vmatmul.mubr.msk.f32.gmra.mrb[36].mxu1 %vm581_vm1, %v1052_v43 }
  0x6b   : > { %1236 = vmatprep.mubr.f32.mxu0 %v2698_v0  ;;  %1343 = vmatprep.mubr.f32.mxu1 %v2698_v0 }
  0x6e   : > { %2478 = vmatmul.mubr.msk.f32.gmra.mrb[38].mxu0 %vm581_vm1, %v1053_v44  ;;  %2487 = vmatmul.mubr.msk.f32.gmra.mrb[38].mxu1 %vm581_vm1, %v1053_v44 }
  0x6f   : > { %1242 = vmatprep.mubr.f32.mxu0 %v2698_v0  ;;  %1349 = vmatprep.mubr.f32.mxu1 %v2698_v0 }
  0x72   : > { %2479 = vmatmul.mubr.msk.f32.gmra.mrb[40].mxu0 %vm581_vm1, %v1054_v45  ;;  %2488 = vmatmul.mubr.msk.f32.gmra.mrb[40].mxu1 %vm581_vm1, %v1054_v45 }
  0x73   : > { %1420 = vmatprep.mubr.f32.mxu0 %v2698_v0  ;;  %1527 = vmatprep.mubr.f32.mxu1 %v2698_v0 }
  0x76   : > { %2491 = vmatmul.mubr.msk.f32.vlgmr.msra.gmra.mrb[42].mxu0 %vm581_vm1, %v1048_v39  ;;  %2500 = vmatmul.mubr.msk.f32.vlgmr.msra.gmra.mrb[42].mxu1 %vm581_vm1, %v1048_v39 }
  0x77   : > { %1426 = vmatprep.mubr.f32.mxu0 %v2698_v0  ;;  %1533 = vmatprep.mubr.f32.mxu1 %v2698_v0 }
  0x7a   : > { %2492 = vmatmul.mubr.msk.f32.gmra.mrb[44].mxu0 %vm581_vm1, %v1049_v40  ;;  %2501 = vmatmul.mubr.msk.f32.gmra.mrb[44].mxu1 %vm581_vm1, %v1049_v40 }
  0x7b   : > { %1432 = vmatprep.mubr.f32.mxu0 %v2698_v0  ;;  %1539 = vmatprep.mubr.f32.mxu1 %v2698_v0 }
  0x7e   : > { %2493 = vmatmul.mubr.msk.f32.gmra.mrb[46].mxu0 %vm581_vm1, %v1050_v41  ;;  %2502 = vmatmul.mubr.msk.f32.gmra.mrb[46].mxu1 %vm581_vm1, %v1050_v41 }
  0x7f   : > { %1438 = vmatprep.mubr.f32.mxu0 %v2698_v0  ;;  %1545 = vmatprep.mubr.f32.mxu1 %v2698_v0 }
  0x82   : > { %2494 = vmatmul.mubr.msk.f32.gmra.mrb[48].mxu0 %vm581_vm1, %v1051_v42  ;;  %2503 = vmatmul.mubr.msk.f32.gmra.mrb[48].mxu1 %vm581_vm1, %v1051_v42 }
  0x83   : > { %1444 = vmatprep.mubr.f32.mxu0 %v2698_v0  ;;  %1551 = vmatprep.mubr.f32.mxu1 %v2698_v0 }
  0x86   : > { %2495 = vmatmul.mubr.msk.f32.gmra.mrb[50].mxu0 %vm581_vm1, %v1052_v43  ;;  %2504 = vmatmul.mubr.msk.f32.gmra.mrb[50].mxu1 %vm581_vm1, %v1052_v43 }
  0x87   : > { %1450 = vmatprep.mubr.f32.mxu0 %v2698_v0  ;;  %1557 = vmatprep.mubr.f32.mxu1 %v2698_v0 }
  0x8a   : > { %2496 = vmatmul.mubr.msk.f32.gmra.mrb[52].mxu0 %vm581_vm1, %v1053_v44  ;;  %2505 = vmatmul.mubr.msk.f32.gmra.mrb[52].mxu1 %vm581_vm1, %v1053_v44 }
  0x8b   : > { %1456 = vmatprep.mubr.f32.mxu0 %v2698_v0  ;;  %1563 = vmatprep.mubr.f32.mxu1 %v2698_v0 }
  0x8e   : > { %2497 = vmatmul.mubr.msk.f32.gmra.mrb[54].mxu0 %vm581_vm1, %v1054_v45  ;;  %2506 = vmatmul.mubr.msk.f32.gmra.mrb[54].mxu1 %vm581_vm1, %v1054_v45 }
  0x99   : > { %v3066_v46 = vpop.permute.xlu0 %540  ;;  %v3087_v57 = vpop.permute.xlu1 %550 }
  0x9d   : > { %v3080_v54 = vpop.permute.xlu0 %545  ;;  %v3139_v25 = vpop.permute.xlu1 %555 }
  0xa8   : > { %v3211_v42 = vpop.permute.xlu0 %560 }
  0xf5   : > { %v686_v47 = vpop.f32.mrb[0].mxu0  ;;  %v793_v48 = vpop.f32.mrb[0].mxu1 }
  0xf6   : > { %v3072_v49 = vadd.f32 %v686_v47, %v3066_v46  ;;  %v688_v50 = vpop.f32.mrb[1].mxu0  ;;  %v3075_v51 = vadd.f32 %v793_v48, %v3066_v46  ;;  %v795_v52 = vpop.f32.mrb[1].mxu1 }
  0xf7   : > { %v3078_v53 = vadd.f32 %v688_v50, %v3066_v46  ;;  %v3083_v55 = vadd.f32 %v795_v52, %v3066_v46 }
  0xf8   : > { %v1718_v56 = vmul.f32 %v3072_v49, %v3072_v49  ;;  %v1720_v60 = vmul.f32 %v3075_v51, %v3075_v51 }
  0xf9   : > { %v1719_v58 = vmul.f32 %v3078_v53, %v3078_v53  ;;  %v2530_v59 = vpack.c.bf16 %v3078_v53, %v3072_v49  ;;  %v692_v61 = vpop.f32.mrb[2].mxu0  ;;  %v2531_v62 = vpack.c.bf16 %v3083_v55, %v3075_v51  ;;  %v799_v63 = vpop.f32.mrb[2].mxu1  ;;  %v1721_v7 = vmul.f32 %v3083_v55, %v3083_v55 }
  0xfa   : > { %v3098_v1 = vadd.f32 %v692_v61, %v3080_v54  ;;  %v694_v2 = vpop.f32.mrb[3].mxu0  ;;  %v3101_v3 = vadd.f32 %v799_v63, %v3080_v54  ;;  %v801_v4 = vpop.f32.mrb[3].mxu1 }
  0xfb   : > { %v1774_v5 = vadd.f32 %v1719_v58, %v1718_v56  ;;  %2087 = vst [vmem:[%s3103_s17] sm:$0xff] %v2530_v59  ;;  %v3107_v6 = vadd.f32 %v694_v2, %v3080_v54  ;;  %2088 = vst [vmem:[%s3103_s17 + $0x8] sm:$0xff] %v2531_v62  ;;  %v3113_v8 = vadd.f32 %v801_v4, %v3080_v54 }
  0xfc   : > { %v1726_v9 = vmul.f32 %v3098_v1, %v3098_v1  ;;  %v1728_v10 = vmul.f32 %v3101_v3, %v3101_v3 }
  0xfd   : > { %v1775_v11 = vadd.f32 %v1774_v5, %v1720_v60  ;;  %v1727_v12 = vmul.f32 %v3107_v6, %v3107_v6  ;;  %v2534_v13 = vpack.c.bf16 %v3107_v6, %v3098_v1  ;;  %v698_v14 = vpop.f32.mrb[4].mxu0  ;;  %v1729_v15 = vmul.f32 %v3113_v8, %v3113_v8  ;;  %v805_v16 = vpop.f32.mrb[4].mxu1 }
  0xfe   : > { %v3126_v17 = vadd.f32 %v698_v14, %v3087_v57  ;;  %v700_v18 = vpop.f32.mrb[5].mxu0  ;;  %v2535_v19 = vpack.c.bf16 %v3113_v8, %v3101_v3  ;;  %v3131_v20 = vadd.f32 %v805_v16, %v3087_v57  ;;  %v807_v21 = vpop.f32.mrb[5].mxu1 }
  0xff   : > { %v1783_v22 = vadd.f32 %v1727_v12, %v1726_v9  ;;  %2091 = vst [vmem:[%s3103_s17 + $0x20] sm:$0xff] %v2534_v13  ;;  %v3134_v23 = vadd.f32 %v1775_v11, %v1721_v7  ;;  %v3137_v24 = vadd.f32 %v700_v18, %v3087_v57  ;;  %v3142_v26 = vadd.f32 %v807_v21, %v3087_v57  ;;  %v3241_v7 = vpop.permute.xlu1 %565 }
 0x100   : > { %v1734_v27 = vmul.f32 %v3126_v17, %v3126_v17  ;;  %2092 = vst [vmem:[%s3103_s17 + $0x28] sm:$0xff] %v2535_v19  ;;  %v1736_v31 = vmul.f32 %v3131_v20, %v3131_v20 }
 0x101   : > { %v1784_v28 = vadd.f32 %v1783_v22, %v1728_v10  ;;  %v1735_v29 = vmul.f32 %v3137_v24, %v3137_v24  ;;  %v2538_v30 = vpack.c.bf16 %v3137_v24, %v3126_v17  ;;  %v704_v32 = vpop.f32.mrb[6].mxu0  ;;  %v811_v33 = vpop.f32.mrb[6].mxu1  ;;  %v1737_v35 = vmul.f32 %v3142_v26, %v3142_v26 }
 0x102   : > { %v3196_v0 = vadd.f32 %v704_v32, %v3139_v25  ;;  %v706_v34 = vpop.f32.mrb[7].mxu0  ;;  %v2539_v36 = vpack.c.bf16 %v3142_v26, %v3131_v20  ;;  %v3203_v37 = vadd.f32 %v811_v33, %v3139_v25  ;;  %v813_v38 = vpop.f32.mrb[7].mxu1 }
 0x103   : > { %v1792_v39 = vadd.f32 %v1735_v29, %v1734_v27  ;;  %2095 = vst [vmem:[%s3103_s17 + $0x40] sm:$0xff] %v2538_v30  ;;  %v3206_v40 = vadd.f32 %v1784_v28, %v1729_v15  ;;  %v3209_v41 = vadd.f32 %v706_v34, %v3139_v25  ;;  %v3214_v43 = vadd.f32 %v813_v38, %v3139_v25  ;;  %v3266_v30 = vpop.permute.xlu0 %570 }
 0x104   : > { %v1742_v44 = vmul.f32 %v3196_v0, %v3196_v0  ;;  %2096 = vst [vmem:[%s3103_s17 + $0x48] sm:$0xff] %v2539_v36  ;;  %v1744_v50 = vmul.f32 %v3203_v37, %v3203_v37 }
 0x105   : > { %v1793_v45 = vadd.f32 %v1792_v39, %v1736_v31  ;;  %v1743_v47 = vmul.f32 %v3209_v41, %v3209_v41  ;;  %v2542_v48 = vpack.c.bf16 %v3209_v41, %v3196_v0  ;;  %v710_v52 = vpop.f32.mrb[8].mxu0  ;;  %v817_v56 = vpop.f32.mrb[8].mxu1  ;;  %v1745_v60 = vmul.f32 %v3214_v43, %v3214_v43 }
 0x106   : > { %v3226_v58 = vadd.f32 %v710_v52, %v3211_v42  ;;  %v712_v59 = vpop.f32.mrb[9].mxu0  ;;  %v2543_v61 = vpack.c.bf16 %v3214_v43, %v3203_v37  ;;  %v3233_v62 = vadd.f32 %v817_v56, %v3211_v42  ;;  %v819_v63 = vpop.f32.mrb[9].mxu1 }
 0x107   : > { %v1801_v2 = vadd.f32 %v1743_v47, %v1742_v44  ;;  %2099 = vst [vmem:[%s3103_s17 + $0x60] sm:$0xff] %v2542_v48  ;;  %v3236_v4 = vadd.f32 %v1793_v45, %v1737_v35  ;;  %v3239_v5 = vadd.f32 %v712_v59, %v3211_v42  ;;  %v3244_v9 = vadd.f32 %v819_v63, %v3211_v42 }
 0x108   : > { %v1750_v10 = vmul.f32 %v3226_v58, %v3226_v58  ;;  %2100 = vst [vmem:[%s3103_s17 + $0x68] sm:$0xff] %v2543_v61  ;;  %v1752_v13 = vmul.f32 %v3233_v62, %v3233_v62 }
 0x109   : > { %v1802_v11 = vadd.f32 %v1801_v2, %v1744_v50  ;;  %v1751_v12 = vmul.f32 %v3239_v5, %v3239_v5  ;;  %v716_v14 = vpop.f32.mrb[10].mxu0  ;;  %v823_v15 = vpop.f32.mrb[10].mxu1  ;;  %v1753_v19 = vmul.f32 %v3244_v9, %v3244_v9 }
 0x10a   : > { %v3254_v16 = vadd.f32 %v716_v14, %v3241_v7  ;;  %v718_v18 = vpop.f32.mrb[11].mxu0  ;;  %v3259_v21 = vadd.f32 %v823_v15, %v3241_v7  ;;  %v825_v22 = vpop.f32.mrb[11].mxu1 }
 0x10b   : > { %v1810_v27 = vadd.f32 %v1751_v12, %v1750_v10  ;;  %v3261_v28 = vadd.f32 %v1802_v11, %v1745_v60  ;;  %v3264_v29 = vadd.f32 %v718_v18, %v3241_v7  ;;  %v3269_v31 = vadd.f32 %v825_v22, %v3241_v7 }
 0x10c   : > { %v1758_v32 = vmul.f32 %v3254_v16, %v3254_v16  ;;  %v1760_v35 = vmul.f32 %v3259_v21, %v3259_v21 }
 0x10d   : > { %v1811_v33 = vadd.f32 %v1810_v27, %v1752_v13  ;;  %v1759_v34 = vmul.f32 %v3264_v29, %v3264_v29  ;;  %v722_v36 = vpop.f32.mrb[12].mxu0  ;;  %v829_v38 = vpop.f32.mrb[12].mxu1  ;;  %v1761_v45 = vmul.f32 %v3269_v31, %v3269_v31 }
 0x10e   : > { %v3278_v39 = vadd.f32 %v722_v36, %v3266_v30  ;;  %v724_v44 = vpop.f32.mrb[13].mxu0  ;;  %v3283_v47 = vadd.f32 %v829_v38, %v3266_v30  ;;  %v831_v48 = vpop.f32.mrb[13].mxu1 }
 0x10f   : > { %v1819_v50 = vadd.f32 %v1759_v34, %v1758_v32  ;;  %v3285_v52 = vadd.f32 %v1811_v33, %v1753_v19  ;;  %v3288_v56 = vadd.f32 %v724_v44, %v3266_v30  ;;  %v3291_v59 = vadd.f32 %v831_v48, %v3266_v30 }
 0x110   : > { %v1766_v60 = vmul.f32 %v3278_v39, %v3278_v39  ;;  %v1768_v2 = vmul.f32 %v3283_v47, %v3283_v47 }
 0x111   : > { %v1820_v61 = vadd.f32 %v1819_v50, %v1760_v35  ;;  %v1767_v63 = vmul.f32 %v3288_v56, %v3288_v56  ;;  %v900_v10 = vpop.f32.mrb[14].mxu0  ;;  %v1007_v11 = vpop.f32.mrb[14].mxu1  ;;  %v1769_v13 = vmul.f32 %v3291_v59, %v3291_v59 }
 0x112   : > { %v3300_v12 = vadd.f32 %v900_v10, %v3066_v46  ;;  %v902_v14 = vpop.f32.mrb[15].mxu0  ;;  %v3305_v15 = vadd.f32 %v1007_v11, %v3066_v46  ;;  %v1009_v18 = vpop.f32.mrb[15].mxu1 }
 0x113   : > { %v1828_v19 = vadd.f32 %v1767_v63, %v1766_v60  ;;  %v3307_v22 = vadd.f32 %v1820_v61, %v1761_v45  ;;  %v3310_v27 = vadd.f32 %v902_v14, %v3066_v46  ;;  %v3313_v32 = vadd.f32 %v1009_v18, %v3066_v46 }
 0x114   : > { %v1722_v33 = vmul.f32 %v3300_v12, %v3300_v12  ;;  %v1724_v50 = vmul.f32 %v3305_v15, %v3305_v15 }
 0x115   : > { %v1829_v34 = vadd.f32 %v1828_v19, %v1768_v2  ;;  %v1723_v35 = vmul.f32 %v3310_v27, %v3310_v27  ;;  %v2532_v36 = vpack.c.bf16 %v3310_v27, %v3300_v12  ;;  %v906_v38 = vpop.f32.mrb[16].mxu0  ;;  %v2533_v44 = vpack.c.bf16 %v3313_v32, %v3305_v15  ;;  %v1013_v45 = vpop.f32.mrb[16].mxu1 }
 0x116   : > { %v1777_v48 = vadd.f32 %v3134_v23, %v1722_v33  ;;  %v3325_v46 = vadd.f32 %v906_v38, %v3080_v54  ;;  %v908_v60 = vpop.f32.mrb[17].mxu0  ;;  %v3330_v61 = vadd.f32 %v1013_v45, %v3080_v54  ;;  %v1015_v63 = vpop.f32.mrb[17].mxu1  ;;  %v1725_v14 = vmul.f32 %v3313_v32, %v3313_v32 }
 0x117   : > { %v3332_v2 = vadd.f32 %v1829_v34, %v1769_v13  ;;  %2089 = vst [vmem:[%s3103_s17 + $0x10] sm:$0xff] %v2532_v36  ;;  %v3336_v10 = vadd.f32 %v908_v60, %v3080_v54  ;;  %2090 = vst [vmem:[%s3103_s17 + $0x18] sm:$0xff] %v2533_v44  ;;  %v3340_v23 = vadd.f32 %v1015_v63, %v3080_v54 }
 0x118   : > { %v1730_v11 = vmul.f32 %v3325_v46, %v3325_v46  ;;  %v1778_v18 = vadd.f32 %v1777_v48, %v1723_v35  ;;  %v1732_v54 = vmul.f32 %v3330_v61, %v3330_v61 }
 0x119   : > { %3851 = vst [vmem:[#allocation9_spill] sm:$0xff] %v3336_v10  ;;  %v1731_v13 = vmul.f32 %v3336_v10, %v3336_v10  ;;  %v2536_v19 = vpack.c.bf16 %v3336_v10, %v3325_v46  ;;  %v912_v33 = vpop.f32.mrb[18].mxu0  ;;  %v2537_v34 = vpack.c.bf16 %v3340_v23, %v3330_v61  ;;  %v1019_v36 = vpop.f32.mrb[18].mxu1 }
 0x11a   : > { %v1786_v38 = vadd.f32 %v3206_v40, %v1730_v11  ;;  %v3356_v44 = vadd.f32 %v912_v33, %v3087_v57  ;;  %v914_v35 = vpop.f32.mrb[19].mxu0  ;;  %v3359_v45 = vadd.f32 %v1019_v36, %v3087_v57  ;;  %v1021_v48 = vpop.f32.mrb[19].mxu1  ;;  %v1779_v60 = vadd.f32 %v1778_v18, %v1724_v50 }
 0x11b   : > { %2093 = vst [vmem:[%s3103_s17 + $0x30] sm:$0xff] %v2536_v19  ;;  %v3363_v63 = vadd.f32 %v914_v35, %v3087_v57  ;;  %2094 = vst [vmem:[%s3103_s17 + $0x38] sm:$0xff] %v2537_v34  ;;  %v3367_v10 = vadd.f32 %v1021_v48, %v3087_v57  ;;  %v1733_v33 = vmul.f32 %v3340_v23, %v3340_v23 }
 0x11c   : > { %3852 = vst [vmem:[#allocation10_spill] sm:$0xff] %v3356_v44  ;;  %3853 = vst [vmem:[#allocation11_spill] sm:$0xff] %v3359_v45  ;;  %v1738_v40 = vmul.f32 %v3356_v44, %v3356_v44  ;;  %v1780_v11 = vadd.f32 %v1779_v60, %v1725_v14  ;;  %v1787_v36 = vadd.f32 %v1786_v38, %v1731_v13 }
 0x11d   : > { %3854 = vst [vmem:[#allocation12_spill] sm:$0xff] %v3363_v63  ;;  %v1739_v50 = vmul.f32 %v3363_v63, %v3363_v63  ;;  %v2540_v18 = vpack.c.bf16 %v3363_v63, %v3356_v44  ;;  %v918_v19 = vpop.f32.mrb[20].mxu0  ;;  %v1740_v57 = vmul.f32 %v3359_v45, %v3359_v45  ;;  %v2541_v34 = vpack.c.bf16 %v3367_v10, %v3359_v45  ;;  %v1025_v14 = vpop.f32.mrb[20].mxu1 }
 0x11e   : > { %v1795_v35 = vadd.f32 %v3236_v4, %v1738_v40  ;;  %v3383_v48 = vadd.f32 %v918_v19, %v3139_v25  ;;  %v920_v13 = vpop.f32.mrb[21].mxu0  ;;  %1781 = vadd.xlane.f32.xlu0 %v1780_v11  ;;  %v3386_v38 = vadd.f32 %v1025_v14, %v3139_v25  ;;  %v1027_v60 = vpop.f32.mrb[21].mxu1  ;;  %v1788_v63 = vadd.f32 %v1787_v36, %v1732_v54 }
 0x11f   : > { %2097 = vst [vmem:[%s3103_s17 + $0x50] sm:$0xff] %v2540_v18  ;;  %v3390_v44 = vadd.f32 %v920_v13, %v3139_v25  ;;  %2098 = vst [vmem:[%s3103_s17 + $0x58] sm:$0xff] %v2541_v34  ;;  %v3394_v45 = vadd.f32 %v1027_v60, %v3139_v25  ;;  %v1741_v11 = vmul.f32 %v3367_v10, %v3367_v10 }
 0x120   : > { %3855 = vst [vmem:[#allocation13_spill] sm:$0xff] %v3383_v48  ;;  %3856 = vst [vmem:[#allocation14_spill] sm:$0xff] %v3386_v38  ;;  %v1746_v4 = vmul.f32 %v3383_v48, %v3383_v48  ;;  %v1789_v40 = vadd.f32 %v1788_v63, %v1733_v33  ;;  %v1796_v19 = vadd.f32 %v1795_v35, %v1739_v50 }
 0x121   : > { %3857 = vst [vmem:[#allocation15_spill] sm:$0xff] %v3390_v44  ;;  %3858 = vst [vmem:[#allocation16_spill] sm:$0xff] %v3394_v45  ;;  %v1747_v54 = vmul.f32 %v3390_v44, %v3390_v44  ;;  %v2544_v36 = vpack.c.bf16 %v3390_v44, %v3383_v48  ;;  %v924_v18 = vpop.f32.mrb[22].mxu0  ;;  %v1748_v25 = vmul.f32 %v3386_v38, %v3386_v38  ;;  %v1031_v63 = vpop.f32.mrb[22].mxu1 }
 0x122   : > { %v2545_v34 = vpack.c.bf16 %v3394_v45, %v3386_v38  ;;  %v1804_v33 = vadd.f32 %v3261_v28, %v1746_v4  ;;  %v3410_v14 = vadd.f32 %v924_v18, %v3211_v42  ;;  %v926_v50 = vpop.f32.mrb[23].mxu0  ;;  %1790 = vadd.xlane.f32.xlu1 %v1789_v40  ;;  %v3413_v35 = vadd.f32 %v1031_v63, %v3211_v42  ;;  %v1033_v13 = vpop.f32.mrb[23].mxu1 }
 0x123   : > { %v1797_v60 = vadd.f32 %v1796_v19, %v1740_v57  ;;  %2101 = vst [vmem:[%s3103_s17 + $0x70] sm:$0xff] %v2544_v36  ;;  %v3417_v44 = vadd.f32 %v926_v50, %v3211_v42  ;;  %v3427_v63 = vadd.f32 %v1033_v13, %v3211_v42  ;;  %v1749_v19 = vmul.f32 %v3394_v45, %v3394_v45 }
 0x124   : > { %3859 = vst [vmem:[#allocation17_spill] sm:$0xff] %v3410_v14  ;;  %3860 = vst [vmem:[#allocation18_spill] sm:$0xff] %v3413_v35  ;;  %v1754_v38 = vmul.f32 %v3410_v14, %v3410_v14  ;;  %v1805_v28 = vadd.f32 %v1804_v33, %v1747_v54  ;;  %v1756_v40 = vmul.f32 %v3413_v35, %v3413_v35 }
 0x125   : > { %3861 = vst [vmem:[#allocation19_spill] sm:$0xff] %v3417_v44  ;;  %2102 = vst [vmem:[%s3103_s17 + $0x78] sm:$0xff] %v2545_v34  ;;  %v1798_v48 = vadd.f32 %v1797_v60, %v1741_v11  ;;  %v1755_v4 = vmul.f32 %v3417_v44, %v3417_v44  ;;  %v930_v18 = vpop.f32.mrb[24].mxu0  ;;  %v1037_v57 = vpop.f32.mrb[24].mxu1 }
 0x126   : > { %3862 = vst [vmem:[#allocation20_spill] sm:$0xff] %v3427_v63  ;;  %v1813_v36 = vadd.f32 %v3285_v52, %v1754_v38  ;;  %v3433_v34 = vadd.f32 %v930_v18, %v3241_v7  ;;  %v932_v11 = vpop.f32.mrb[25].mxu0  ;;  %v3436_v54 = vadd.f32 %v1037_v57, %v3241_v7  ;;  %v1039_v33 = vpop.f32.mrb[25].mxu1  ;;  %v1806_v50 = vadd.f32 %v1805_v28, %v1748_v25 }
 0x127   : > { %1799 = vadd.xlane.f32.xlu0 %v1798_v48  ;;  %v3439_v60 = vadd.f32 %v932_v11, %v3241_v7  ;;  %v1757_v38 = vmul.f32 %v3427_v63, %v3427_v63  ;;  %v3448_v18 = vadd.f32 %v1039_v33, %v3241_v7  ;;  %v3462_v7 = vpop.permute.xlu1 %1064 }
 0x128   : > { %3863 = vst [vmem:[#allocation21_spill] sm:$0xff] %v3433_v34  ;;  %3864 = vst [vmem:[#allocation22_spill] sm:$0xff] %v3436_v54  ;;  %v1814_v42 = vadd.f32 %v1813_v36, %v1755_v4  ;;  %v1762_v13 = vmul.f32 %v3433_v34, %v3433_v34  ;;  %v1807_v44 = vadd.f32 %v1806_v50, %v1749_v19 }
 0x129   : > { %3865 = vst [vmem:[#allocation23_spill] sm:$0xff] %v3439_v60  ;;  %v1763_v52 = vmul.f32 %v3439_v60, %v3439_v60  ;;  %v936_v48 = vpop.f32.mrb[26].mxu0  ;;  %3866 = vst [vmem:[#allocation24_spill] sm:$0xff] %v3448_v18  ;;  %v1043_v57 = vpop.f32.mrb[26].mxu1  ;;  %v1764_v4 = vmul.f32 %v3436_v54, %v3436_v54 }
 0x12a   : > { %v1822_v25 = vadd.f32 %v3307_v22, %v1762_v13  ;;  %v3452_v28 = vadd.f32 %v936_v48, %v3266_v30  ;;  %v938_v19 = vpop.f32.mrb[27].mxu0  ;;  %1808 = vadd.xlane.f32.xlu1 %v1807_v44  ;;  %v1045_v36 = vpop.f32.mrb[27].mxu1  ;;  %v1815_v11 = vadd.f32 %v1814_v42, %v1756_v40  ;;  %v3460_v60 = vadd.f32 %v1043_v57, %v3266_v30 }
 0x12b   : > { %v3457_v50 = vadd.f32 %v938_v19, %v3266_v30  ;;  %v1765_v44 = vmul.f32 %v3448_v18, %v3448_v18 }
 0x12c   : > { %3867 = vst [vmem:[#allocation25_spill] sm:$0xff] %v3452_v28  ;;  %3869 = vst [vmem:[#allocation27_spill] sm:$0xff] %v3460_v60  ;;  %v1823_v33 = vadd.f32 %v1822_v25, %v1763_v52  ;;  %v1770_v22 = vmul.f32 %v3452_v28, %v3452_v28  ;;  %v1816_v13 = vadd.f32 %v1815_v11, %v1757_v38 }
 0x12d   : > { %3868 = vst [vmem:[#allocation26_spill] sm:$0xff] %v3457_v50  ;;  %v1771_v48 = vmul.f32 %v3457_v50, %v3457_v50  ;;  %v1208_v40 = vpop.f32.mrb[28].mxu0  ;;  %v1315_v42 = vpop.f32.mrb[28].mxu1  ;;  %v1772_v38 = vmul.f32 %v3460_v60, %v3460_v60  ;;  %v3476_v11 = vadd.f32 %v1045_v36, %v3266_v30 }
 0x12e   : > { %v1831_v19 = vadd.f32 %v3332_v2, %v1770_v22  ;;  %v1209_v57 = vadd.f32 %v1208_v40, %v3462_v7  ;;  %v1316_v54 = vadd.f32 %v1315_v42, %v3462_v7  ;;  %v1210_v34 = vpop.f32.mrb[29].mxu0  ;;  %v1317_v52 = vpop.f32.mrb[29].mxu1  ;;  %1817 = vadd.xlane.f32.xlu0 %v1816_v13  ;;  %v1824_v25 = vadd.f32 %v1823_v33, %v1764_v4 }
 0x12f   : > { %v1211_v50 = vadd.f32 %v1210_v34, %v3462_v7  ;;  %v1318_v28 = vadd.f32 %v1317_v52, %v3462_v7  ;;  %v3482_v42 = vpop.permute.xlu0 %1069 }
 0x130   : > { %v1832_v18 = vadd.f32 %v1831_v19, %v1771_v48  ;;  %v1577_v2 = vmul.f32 %v1209_v57, %v3072_v49  ;;  %v1858_v22 = vmul.f32 %v1209_v57, %v1209_v57  ;;  %v1579_v40 = vmul.f32 %v1316_v54, %v3075_v51 }
 0x131   : > { %v1860_v13 = vmul.f32 %v1316_v54, %v1316_v54  ;;  %v1578_v4 = vmul.f32 %v1211_v50, %v3078_v53  ;;  %v1859_v33 = vmul.f32 %v1211_v50, %v1211_v50  ;;  %v1580_v60 = vmul.f32 %v1318_v28, %v3083_v55  ;;  %v1214_v30 = vpop.f32.mrb[30].mxu0  ;;  %v1321_v36 = vpop.f32.mrb[30].mxu1 }
 0x132   : > { %v1861_v63 = vmul.f32 %v1318_v28, %v1318_v28  ;;  %v1215_v34 = vadd.f32 %v1214_v30, %v3482_v42  ;;  %v1322_v48 = vadd.f32 %v1321_v36, %v3482_v42  ;;  %v1216_v19 = vpop.f32.mrb[31].mxu0  ;;  %v1323_v49 = vpop.f32.mrb[31].mxu1  ;;  %v1825_v57 = vadd.f32 %v1824_v25, %v1765_v44 }
 0x133   : > { %v1633_v52 = vadd.f32 %v1578_v4, %v1577_v2  ;;  %v1914_v51 = vadd.f32 %v1859_v33, %v1858_v22  ;;  %v1217_v35 = vadd.f32 %v1216_v19, %v3482_v42  ;;  %v1324_v54 = vadd.f32 %v1323_v49, %v3482_v42  ;;  %v3492_v28 = vpop.permute.xlu1 %1074 }
 0x134   : > { %v1585_v53 = vmul.f32 %v1215_v34, %v3098_v1  ;;  %v1866_v50 = vmul.f32 %v1215_v34, %v1215_v34  ;;  %v1587_v55 = vmul.f32 %v1322_v48, %v3101_v3  ;;  %v1868_v14 = vmul.f32 %v1322_v48, %v1322_v48  ;;  %1826 = vadd.xlane.f32.xlu1 %v1825_v57 }
 0x135   : > { %v1634_v30 = vadd.f32 %v1633_v52, %v1579_v40  ;;  %v1915_v36 = vadd.f32 %v1914_v51, %v1860_v13  ;;  %v1586_v45 = vmul.f32 %v1217_v35, %v3107_v6  ;;  %v1867_v44 = vmul.f32 %v1217_v35, %v1217_v35  ;;  %v1220_v25 = vpop.f32.mrb[32].mxu0  ;;  %v1327_v2 = vpop.f32.mrb[32].mxu1 }
 0x136   : > { %v1588_v22 = vmul.f32 %v1324_v54, %v3113_v8  ;;  %v1869_v4 = vmul.f32 %v1324_v54, %v1324_v54  ;;  %v1221_v33 = vadd.f32 %v1220_v25, %v3492_v28  ;;  %v1328_v1 = vadd.f32 %v1327_v2, %v3492_v28  ;;  %v1222_v34 = vpop.f32.mrb[33].mxu0  ;;  %v1329_v3 = vpop.f32.mrb[33].mxu1 }
 0x137   : > { %v3498_v48 = vadd.f32 %v1634_v30, %v1580_v60  ;;  %v3500_v19 = vadd.f32 %v1915_v36, %v1861_v63  ;;  %v1642_v40 = vadd.f32 %v1586_v45, %v1585_v53  ;;  %v1923_v13 = vadd.f32 %v1867_v44, %v1866_v50  ;;  %v3504_v35 = vpop.permute.xlu0 %1079 }
 0x138   : > { %v1773_v6 = vmul.f32 %v3476_v11, %v3476_v11  ;;  %v1593_v8 = vmul.f32 %v1221_v33, %v3126_v17  ;;  %v1874_v49 = vmul.f32 %v1221_v33, %v1221_v33  ;;  %v1595_v57 = vmul.f32 %v1328_v1, %v3131_v20 }
 0x139   : > { %v1643_v52 = vadd.f32 %v1642_v40, %v1587_v55  ;;  %v1924_v51 = vadd.f32 %v1923_v13, %v1868_v14  ;;  %v1223_v54 = vadd.f32 %v1222_v34, %v3492_v28  ;;  %v1330_v60 = vadd.f32 %v1329_v3, %v3492_v28  ;;  %v1226_v63 = vpop.f32.mrb[34].mxu0  ;;  %v1333_v30 = vpop.f32.mrb[34].mxu1 }
 0x13a   : > { %v1876_v45 = vmul.f32 %v1328_v1, %v1328_v1  ;;  %v1833_v53 = vadd.f32 %v1832_v18, %v1772_v38  ;;  %v1227_v50 = vadd.f32 %v1226_v63, %v3504_v35  ;;  %v1334_v36 = vadd.f32 %v1333_v30, %v3504_v35  ;;  %v1228_v44 = vpop.f32.mrb[35].mxu0  ;;  %v1335_v25 = vpop.f32.mrb[35].mxu1 }
 0x13b   : > { %v3512_v17 = vadd.f32 %v1643_v52, %v1588_v22  ;;  %v3514_v2 = vadd.f32 %v1924_v51, %v1869_v4  ;;  %v1594_v20 = vmul.f32 %v1223_v54, %v3137_v24  ;;  %v1875_v14 = vmul.f32 %v1223_v54, %v1223_v54  ;;  %v3518_v3 = vpop.permute.xlu1 %1084 }
 0x13c   : > { %v1596_v55 = vmul.f32 %v1330_v60, %v3142_v26  ;;  %v1877_v33 = vmul.f32 %v1330_v60, %v1330_v60  ;;  %v1834_v34 = vadd.f32 %v1833_v53, %v1773_v6  ;;  %v1601_v18 = vmul.f32 %v1227_v50, %v3196_v0 }
 0x13d   : > { %v1651_v38 = vadd.f32 %v1594_v20, %v1593_v8  ;;  %v1932_v1 = vadd.f32 %v1875_v14, %v1874_v49  ;;  %v1882_v40 = vmul.f32 %v1227_v50, %v1227_v50  ;;  %v1603_v13 = vmul.f32 %v1334_v36, %v3203_v37  ;;  %v1232_v22 = vpop.f32.mrb[36].mxu0  ;;  %v1339_v52 = vpop.f32.mrb[36].mxu1 }
 0x13e   : > { %1835 = vadd.xlane.f32.xlu0 %v1834_v34  ;;  %v1884_v4 = vmul.f32 %v1334_v36, %v1334_v36  ;;  %v1229_v24 = vadd.f32 %v1228_v44, %v3504_v35  ;;  %v1336_v51 = vadd.f32 %v1335_v25, %v3504_v35  ;;  %v1233_v26 = vadd.f32 %v1232_v22, %v3518_v3  ;;  %v1234_v6 = vpop.f32.mrb[37].mxu0  ;;  %v1341_v54 = vpop.f32.mrb[37].mxu1 }
 0x13f   : > { %v1652_v60 = vadd.f32 %v1651_v38, %v1595_v57  ;;  %v1933_v63 = vadd.f32 %v1932_v1, %v1876_v45  ;;  %v1340_v0 = vadd.f32 %v1339_v52, %v3518_v3  ;;  %v1235_v8 = vadd.f32 %v1234_v6, %v3518_v3  ;;  %v3527_v49 = vpop.permute.xlu0 %1089 }
 0x140   : > { %v1602_v37 = vmul.f32 %v1229_v24, %v3209_v41  ;;  %v1883_v30 = vmul.f32 %v1229_v24, %v1229_v24  ;;  %v1604_v53 = vmul.f32 %v1336_v51, %v3214_v43  ;;  %v1885_v50 = vmul.f32 %v1336_v51, %v1336_v51 }
 0x141   : > { %v3531_v36 = vadd.f32 %v1652_v60, %v1596_v55  ;;  %v3533_v44 = vadd.f32 %v1933_v63, %v1877_v33  ;;  %v1609_v25 = vmul.f32 %v1233_v26, %v3226_v58  ;;  %v1890_v57 = vmul.f32 %v1233_v26, %v1233_v26  ;;  %v1238_v45 = vpop.f32.mrb[38].mxu0  ;;  %v1345_v20 = vpop.f32.mrb[38].mxu1 }
 0x142   : > { %v1660_v14 = vadd.f32 %v1602_v37, %v1601_v18  ;;  %v1941_v34 = vadd.f32 %v1883_v30, %v1882_v40  ;;  %v1611_v38 = vmul.f32 %v1340_v0, %v3233_v62  ;;  %v1892_v1 = vmul.f32 %v1340_v0, %v1340_v0  ;;  %v1240_v22 = vpop.f32.mrb[39].mxu0  ;;  %v1347_v41 = vpop.f32.mrb[39].mxu1 }
 0x143   : > { %v1610_v52 = vmul.f32 %v1235_v8, %v3239_v5  ;;  %v1891_v43 = vmul.f32 %v1235_v8, %v1235_v8  ;;  %v1342_v55 = vadd.f32 %v1341_v54, %v3518_v3  ;;  %v1239_v33 = vadd.f32 %v1238_v45, %v3527_v49  ;;  %v3548_v37 = vpop.permute.xlu1 %1094 }
 0x144   : > { %v1661_v24 = vadd.f32 %v1660_v14, %v1603_v13  ;;  %v1942_v51 = vadd.f32 %v1941_v34, %v1884_v4  ;;  %v1346_v58 = vadd.f32 %v1345_v20, %v3527_v49  ;;  %v1241_v26 = vadd.f32 %v1240_v22, %v3527_v49 }
 0x145   : > { %v1669_v18 = vadd.f32 %v1610_v52, %v1609_v25  ;;  %v1950_v40 = vadd.f32 %v1891_v43, %v1890_v57  ;;  %v1612_v62 = vmul.f32 %v1342_v55, %v3244_v9  ;;  %v1893_v6 = vmul.f32 %v1342_v55, %v1342_v55  ;;  %v1244_v60 = vpop.f32.mrb[40].mxu0  ;;  %v1351_v63 = vpop.f32.mrb[40].mxu1 }
 0x146   : > { %v3543_v0 = vadd.f32 %v1661_v24, %v1604_v53  ;;  %v3545_v5 = vadd.f32 %v1942_v51, %v1885_v50  ;;  %v1617_v54 = vmul.f32 %v1239_v33, %v3254_v16  ;;  %v1898_v8 = vmul.f32 %v1239_v33, %v1239_v33  ;;  %v1246_v13 = vpop.f32.mrb[41].mxu0  ;;  %v1353_v4 = vpop.f32.mrb[41].mxu1 }
 0x147   : > { %v1670_v30 = vadd.f32 %v1669_v18, %v1611_v38  ;;  %v1951_v45 = vadd.f32 %v1950_v40, %v1892_v1  ;;  %v1619_v25 = vmul.f32 %v1346_v58, %v3259_v21  ;;  %v1900_v57 = vmul.f32 %v1346_v58, %v1346_v58 }
 0x148   : > { %v1618_v9 = vmul.f32 %v1241_v26, %v3264_v29  ;;  %v1899_v20 = vmul.f32 %v1241_v26, %v1241_v26  ;;  %v1348_v53 = vadd.f32 %v1347_v41, %v3527_v49  ;;  %v1245_v50 = vadd.f32 %v1244_v60, %v3548_v37 }
 0x149   : > { %v3554_v14 = vadd.f32 %v1670_v30, %v1612_v62  ;;  %v3556_v16 = vadd.f32 %v1951_v45, %v1893_v6  ;;  %v1352_v34 = vadd.f32 %v1351_v63, %v3548_v37  ;;  %v1247_v22 = vadd.f32 %v1246_v13, %v3548_v37  ;;  %v1422_v38 = vpop.f32.mrb[42].mxu0  ;;  %v1529_v1 = vpop.f32.mrb[42].mxu1 }
 0x14a   : > { %v1678_v52 = vadd.f32 %v1618_v9, %v1617_v54  ;;  %v1959_v21 = vadd.f32 %v1899_v20, %v1898_v8  ;;  %v1620_v43 = vmul.f32 %v1348_v53, %v3269_v31  ;;  %v1901_v29 = vmul.f32 %v1348_v53, %v1348_v53  ;;  %v1424_v55 = vpop.f32.mrb[43].mxu0  ;;  %v1531_v33 = vpop.f32.mrb[43].mxu1 }
 0x14b   : > { %v1625_v41 = vmul.f32 %v1245_v50, %v3278_v39  ;;  %v1906_v24 = vmul.f32 %v1245_v50, %v1245_v50  ;;  %v1627_v51 = vmul.f32 %v1352_v34, %v3283_v47  ;;  %v1908_v58 = vmul.f32 %v1352_v34, %v1352_v34 }
 0x14c   : > { %v1679_v26 = vadd.f32 %v1678_v52, %v1619_v25  ;;  %v1960_v18 = vadd.f32 %v1959_v21, %v1900_v57  ;;  %v1626_v40 = vmul.f32 %v1247_v22, %v3288_v56  ;;  %v1907_v62 = vmul.f32 %v1247_v22, %v1247_v22 }
 0x14d   : > { %v1354_v6 = vadd.f32 %v1353_v4, %v3548_v37  ;;  %v1423_v60 = vadd.f32 %v1422_v38, %v3462_v7  ;;  %v1530_v31 = vadd.f32 %v1529_v1, %v3462_v7  ;;  %v1425_v63 = vadd.f32 %v1424_v55, %v3462_v7  ;;  %v1428_v54 = vpop.f32.mrb[44].mxu0  ;;  %v1535_v8 = vpop.f32.mrb[44].mxu1 }
 0x14e   : > { %v3568_v39 = vadd.f32 %v1679_v26, %v1620_v43  ;;  %v3570_v13 = vadd.f32 %v1960_v18, %v1901_v29  ;;  %v1687_v47 = vadd.f32 %v1626_v40, %v1625_v41  ;;  %v1968_v30 = vadd.f32 %v1907_v62, %v1906_v24  ;;  %v1430_v45 = vpop.f32.mrb[45].mxu0  ;;  %v1537_v25 = vpop.f32.mrb[45].mxu1 }
 0x14f   : > { %v1628_v56 = vmul.f32 %v1354_v6, %v3291_v59  ;;  %v1581_v4 = vmul.f32 %v1423_v60, %v3300_v12  ;;  %v1862_v57 = vmul.f32 %v1423_v60, %v1423_v60  ;;  %v1909_v20 = vmul.f32 %v1354_v6, %v1354_v6 }
 0x150   : > { %v1688_v9 = vadd.f32 %v1687_v47, %v1627_v51  ;;  %v1969_v53 = vadd.f32 %v1968_v30, %v1908_v58  ;;  %v3575_v50 = vmul.f32 %v1530_v31, %v3305_v15  ;;  %v1582_v38 = vmul.f32 %v1425_v63, %v3310_v27 }
 0x151   : > { %v1636_v34 = vadd.f32 %v3498_v48, %v1581_v4  ;;  %v1917_v22 = vadd.f32 %v3500_v19, %v1862_v57  ;;  %v1863_v1 = vmul.f32 %v1425_v63, %v1425_v63  ;;  %v1434_v52 = vpop.f32.mrb[46].mxu0  ;;  %v1541_v21 = vpop.f32.mrb[46].mxu1  ;;  %v1532_v12 = vadd.f32 %v1531_v33, %v3462_v7  ;;  %v3870_v7 = vld [vmem:[#allocation9_spill] sm:$0xff] }
 0x152   : > { %v3580_v43 = vadd.f32 %v1688_v9, %v1628_v56  ;;  %v3582_v59 = vadd.f32 %v1969_v53, %v1909_v20  ;;  %v1429_v29 = vadd.f32 %v1428_v54, %v3482_v42  ;;  %v1436_v55 = vpop.f32.mrb[47].mxu0  ;;  %v1543_v15 = vpop.f32.mrb[47].mxu1  ;;  %v1536_v48 = vadd.f32 %v1535_v8, %v3482_v42  ;;  %v3872_v9 = vld [vmem:[#allocation11_spill] sm:$0xff] }
 0x153   : > { %v1637_v41 = vadd.f32 %v1636_v34, %v1582_v38  ;;  %v1918_v24 = vadd.f32 %v1917_v22, %v1863_v1  ;;  %v1431_v19 = vadd.f32 %v1430_v45, %v3482_v42  ;;  %v3589_v27 = vmul.f32 %v1532_v12, %v3313_v32 }
 0x154   : > { %v1589_v51 = vmul.f32 %v1429_v29, %v3325_v46  ;;  %v1870_v58 = vmul.f32 %v1429_v29, %v1429_v29  ;;  %v1864_v26 = vmul.f32 %v1530_v31, %v1530_v31  ;;  %v3593_v18 = vmul.f32 %v1536_v48, %v3330_v61 }
 0x155   : > { %v1590_v33 = vmul.f32 %v1431_v19, %v3870_v7  ;;  %v1871_v40 = vmul.f32 %v1431_v19, %v1431_v19  ;;  %v1440_v62 = vpop.f32.mrb[48].mxu0  ;;  %v1547_v6 = vpop.f32.mrb[48].mxu1  ;;  %v1538_v54 = vadd.f32 %v1537_v25, %v3482_v42  ;;  %v1435_v32 = vadd.f32 %v1434_v52, %v3492_v28  ;;  %v3871_v42 = vld [vmem:[#allocation10_spill] sm:$0xff] }
 0x156   : > { %v1645_v60 = vadd.f32 %v3512_v17, %v1589_v51  ;;  %v1926_v63 = vadd.f32 %v3514_v2, %v1870_v58  ;;  %v1442_v8 = vpop.f32.mrb[49].mxu0  ;;  %v1549_v46 = vpop.f32.mrb[49].mxu1  ;;  %v1542_v31 = vadd.f32 %v1541_v21, %v3492_v28  ;;  %v1437_v61 = vadd.f32 %v1436_v55, %v3492_v28  ;;  %v3874_v55 = vld [vmem:[#allocation13_spill] sm:$0xff] }
 0x157   : > { %v1544_v47 = vadd.f32 %v1543_v15, %v3492_v28  ;;  %v1441_v30 = vadd.f32 %v1440_v62, %v3504_v35  ;;  %v1865_v45 = vmul.f32 %v1532_v12, %v1532_v12  ;;  %v1592_v17 = vmul.f32 %v1538_v54, %v3340_v23  ;;  %v3873_v28 = vld [vmem:[#allocation12_spill] sm:$0xff] }
 0x158   : > { %v1646_v56 = vadd.f32 %v1645_v60, %v1590_v33  ;;  %v3604_v4 = vadd.f32 %v1926_v63, %v1871_v40  ;;  %v1872_v2 = vmul.f32 %v1536_v48, %v1536_v48  ;;  %v1597_v25 = vmul.f32 %v1435_v32, %v3871_v42  ;;  %v3875_v63 = vld [vmem:[#allocation14_spill] sm:$0xff] }
 0x159   : > { %v1878_v57 = vmul.f32 %v1435_v32, %v1435_v32  ;;  %v3609_v20 = vmul.f32 %v1542_v31, %v3872_v9  ;;  %v1446_v53 = vpop.f32.mrb[50].mxu0  ;;  %v1553_v34 = vpop.f32.mrb[50].mxu1  ;;  %v3611_v22 = vmul.f32 %v1538_v54, %v1538_v54  ;;  %v1598_v38 = vmul.f32 %v1437_v61, %v3873_v28  ;;  %v3876_v32 = vld [vmem:[#allocation15_spill] sm:$0xff] }
 0x15a   : > { %v1879_v1 = vmul.f32 %v1437_v61, %v1437_v61  ;;  %v3615_v52 = vmul.f32 %v1544_v47, %v3367_v10  ;;  %v1448_v21 = vpop.f32.mrb[51].mxu0  ;;  %v1555_v12 = vpop.f32.mrb[51].mxu1  ;;  %v1654_v23 = vadd.f32 %v3531_v36, %v1597_v25  ;;  %v1605_v15 = vmul.f32 %v1441_v30, %v3874_v55 }
 0x15b   : > { %v1935_v29 = vadd.f32 %v3533_v44, %v1878_v57  ;;  %v1886_v48 = vmul.f32 %v1441_v30, %v1441_v30  ;;  %v1548_v19 = vadd.f32 %v1547_v6, %v3504_v35  ;;  %v1443_v51 = vadd.f32 %v1442_v8, %v3504_v35 }
 0x15c   : > { %v1550_v58 = vadd.f32 %v1549_v46, %v3504_v35  ;;  %v1919_v7 = vadd.f32 %v1918_v24, %v1864_v26  ;;  %v3623_v33 = vadd.f32 %v1654_v23, %v1598_v38  ;;  %v1663_v40 = vadd.f32 %v3543_v0, %v1605_v15  ;;  %v3877_v24 = vld [vmem:[#allocation16_spill] sm:$0xff] }
 0x15d   : > { %v1936_v10 = vadd.f32 %v1935_v29, %v1879_v1  ;;  %v1944_v62 = vadd.f32 %v3545_v5, %v1886_v48  ;;  %v1452_v36 = vpop.f32.mrb[52].mxu0  ;;  %v1559_v60 = vpop.f32.mrb[52].mxu1  ;;  %v1880_v44 = vmul.f32 %v1542_v31, %v1542_v31  ;;  %v3628_v54 = vmul.f32 %v1548_v19, %v3875_v63  ;;  %v3879_v29 = vld [vmem:[#allocation18_spill] sm:$0xff]  ;;  %v3880_v48 = vld [vmem:[#allocation19_spill] sm:$0xff] }
 0x15e   : > { %v1606_v6 = vmul.f32 %v1443_v51, %v3876_v32  ;;  %v1887_v61 = vmul.f32 %v1443_v51, %v1443_v51  ;;  %v1454_v8 = vpop.f32.mrb[53].mxu0  ;;  %v1561_v30 = vpop.f32.mrb[53].mxu1  ;;  %v1881_v35 = vmul.f32 %v1544_v47, %v1544_v47  ;;  %v3632_v26 = vmul.f32 %v1550_v58, %v3877_v24  ;;  %v3882_v24 = vld [vmem:[#allocation21_spill] sm:$0xff] }
 0x15f   : > { %v1920_v46 = vadd.f32 %v1919_v7, %v1865_v45  ;;  %v1638_v0 = vadd.f32 %v1637_v41, %v3575_v50  ;;  %v1447_v31 = vadd.f32 %v1446_v53, %v3518_v3  ;;  %v1554_v25 = vadd.f32 %v1553_v34, %v3518_v3  ;;  %v3878_v50 = vld [vmem:[#allocation17_spill] sm:$0xff] }
 0x160   : > { %v1664_v42 = vadd.f32 %v1663_v40, %v1606_v6  ;;  %v3635_v5 = vadd.f32 %v1944_v62, %v1887_v61  ;;  %v1449_v9 = vadd.f32 %v1448_v21, %v3518_v3  ;;  %v1556_v47 = vadd.f32 %v1555_v12, %v3518_v3  ;;  %v3881_v21 = vld [vmem:[#allocation20_spill] sm:$0xff] }
 0x161   : > { %1921 = vadd.xlane.f32.xlu1 %v1920_v46  ;;  %v1639_v57 = vadd.f32 %v1638_v0, %v3589_v27  ;;  %v1647_v28 = vadd.f32 %v1646_v56, %v3593_v18  ;;  %v1458_v38 = vpop.f32.mrb[54].mxu0  ;;  %v1565_v45 = vpop.f32.mrb[54].mxu1  ;;  %v1888_v1 = vmul.f32 %v1548_v19, %v1548_v19  ;;  %v1613_v41 = vmul.f32 %v1447_v31, %v3878_v50  ;;  %v3883_v46 = vld [vmem:[#allocation22_spill] sm:$0xff] }
 0x162   : > { %v1894_v23 = vmul.f32 %v1447_v31, %v1447_v31  ;;  %v1615_v55 = vmul.f32 %v1554_v25, %v3879_v29  ;;  %v1460_v53 = vpop.f32.mrb[55].mxu0  ;;  %v1567_v15 = vpop.f32.mrb[55].mxu1  ;;  %v1889_v34 = vmul.f32 %v1550_v58, %v1550_v58  ;;  %v1614_v27 = vmul.f32 %v1449_v9, %v3880_v48 }
 0x163   : > { %1640 = vadd.xlane.f32.xlu0 %v1639_v57  ;;  %v1895_v51 = vmul.f32 %v1449_v9, %v1449_v9  ;;  %v1616_v7 = vmul.f32 %v1556_v47, %v3881_v21  ;;  %v1672_v3 = vadd.f32 %v3554_v14, %v1613_v41  ;;  %v1648_v56 = vadd.f32 %v1647_v28, %v1592_v17 }
 0x164   : > { %v1953_v18 = vadd.f32 %v3556_v16, %v1894_v23  ;;  %v1928_v12 = vadd.f32 %v3604_v4, %v1872_v2  ;;  %v1453_v19 = vadd.f32 %v1452_v36, %v3527_v49  ;;  %v1560_v40 = vadd.f32 %v1559_v60, %v3527_v49  ;;  %v3884_v36 = vld [vmem:[#allocation23_spill] sm:$0xff] }
 0x165   : > { %v1455_v62 = vadd.f32 %v1454_v8, %v3527_v49  ;;  %v1562_v58 = vadd.f32 %v1561_v30, %v3527_v49  ;;  %v1673_v63 = vadd.f32 %v1672_v3, %v1614_v27  ;;  %1649 = vadd.xlane.f32.xlu1 %v1648_v56  ;;  %v1937_v61 = vadd.f32 %v1936_v10, %v1880_v44  ;;  %v3885_v8 = vld [vmem:[#allocation24_spill] sm:$0xff] }
 0x166   : > { %v1954_v32 = vadd.f32 %v1953_v18, %v1895_v51  ;;  %v1929_v6 = vadd.f32 %v1928_v12, %v3611_v22  ;;  %v1896_v14 = vmul.f32 %v1554_v25, %v1554_v25  ;;  %v1621_v16 = vmul.f32 %v1453_v19, %v3882_v24 }
 0x167   : > { %v1902_v17 = vmul.f32 %v1453_v19, %v1453_v19  ;;  %v1623_v4 = vmul.f32 %v1560_v40, %v3883_v46  ;;  %v1897_v2 = vmul.f32 %v1556_v47, %v1556_v47  ;;  %v1622_v60 = vmul.f32 %v1455_v62, %v3884_v36 }
 0x168   : > { %1930 = vadd.xlane.f32.xlu0 %v1929_v6  ;;  %v1903_v0 = vmul.f32 %v1455_v62, %v1455_v62  ;;  %v1624_v31 = vmul.f32 %v1562_v58, %v3885_v8  ;;  %v1681_v49 = vadd.f32 %v3568_v39, %v1621_v16  ;;  %v1938_v57 = vadd.f32 %v1937_v61, %v1881_v35  ;;  %v3886_v35 = vld [vmem:[#allocation25_spill] sm:$0xff] }
 0x169   : > { %v1962_v30 = vadd.f32 %v3570_v13, %v1902_v17  ;;  %v1656_v22 = vadd.f32 %v3623_v33, %v3609_v20  ;;  %v1459_v10 = vadd.f32 %v1458_v38, %v3548_v37  ;;  %v1566_v44 = vadd.f32 %v1565_v45, %v3548_v37  ;;  %v3887_v20 = vld [vmem:[#allocation27_spill] sm:$0xff]  ;;  %v3888_v45 = vld [vmem:[#allocation26_spill] sm:$0xff] }
 0x16a   : > { %v1461_v25 = vadd.f32 %v1460_v53, %v3548_v37  ;;  %v1568_v9 = vadd.f32 %v1567_v15, %v3548_v37  ;;  %v1682_v47 = vadd.f32 %v1681_v49, %v1622_v60  ;;  %1939 = vadd.xlane.f32.xlu1 %v1938_v57  ;;  %v1665_v39 = vadd.f32 %v1664_v42, %v3628_v54 }
 0x16b   : > { %v1963_v28 = vadd.f32 %v1962_v30, %v1903_v0  ;;  %v1657_v50 = vadd.f32 %v1656_v22, %v3615_v52  ;;  %v1904_v13 = vmul.f32 %v1560_v40, %v1560_v40  ;;  %v1629_v41 = vmul.f32 %v1459_v10, %v3886_v35 }
 0x16c   : > { %v1910_v23 = vmul.f32 %v1459_v10, %v1459_v10  ;;  %v1631_v33 = vmul.f32 %v1566_v44, %v3887_v20  ;;  %v1905_v38 = vmul.f32 %v1562_v58, %v1562_v58  ;;  %v1630_v29 = vmul.f32 %v1461_v25, %v3888_v45 }
 0x16d   : > { %1658 = vadd.xlane.f32.xlu0 %v1657_v50  ;;  %v1911_v53 = vmul.f32 %v1461_v25, %v1461_v25  ;;  %v1632_v37 = vmul.f32 %v1568_v9, %v3476_v11  ;;  %v1690_v15 = vadd.f32 %v3580_v43, %v1629_v41  ;;  %v1666_v52 = vadd.f32 %v1665_v39, %v3632_v26 }
 0x16e   : > { %v1971_v48 = vadd.f32 %v3582_v59, %v1910_v23  ;;  %v1674_v54 = vadd.f32 %v1673_v63, %v1615_v55  ;;  %v1946_v42 = vadd.f32 %v3635_v5, %v1888_v1  ;;  %v1955_v27 = vadd.f32 %v1954_v32, %v1896_v14 }
 0x16f   : > { %v1683_v51 = vadd.f32 %v1682_v47, %v1623_v4  ;;  %v1964_v21 = vadd.f32 %v1963_v28, %v1904_v13  ;;  %v1912_v3 = vmul.f32 %v1566_v44, %v1566_v44  ;;  %v1691_v18 = vadd.f32 %v1690_v15, %v1630_v29 }
 0x170   : > { %v1972_v56 = vadd.f32 %v1971_v48, %v1911_v53  ;;  %v1675_v12 = vadd.f32 %v1674_v54, %v1616_v7  ;;  %v1947_v19 = vadd.f32 %v1946_v42, %v1889_v34  ;;  %v1956_v11 = vadd.f32 %v1955_v27, %v1897_v2 }
 0x171   : > { %1667 = vadd.xlane.f32.xlu0 %v1666_v52  ;;  %v1684_v43 = vadd.f32 %v1683_v51, %v1624_v31  ;;  %v1965_v40 = vadd.f32 %v1964_v21, %v1905_v38  ;;  %v1913_v59 = vmul.f32 %v1568_v9, %v1568_v9  ;;  %v1692_v26 = vadd.f32 %v1691_v18, %v1631_v33 }
 0x172   : > { %1676 = vadd.xlane.f32.xlu1 %v1675_v12  ;;  %v1973_v55 = vadd.f32 %v1972_v56, %v1912_v3 }
 0x173   : > { %v1693_v5 = vadd.f32 %v1692_v26, %v1632_v37 }
 0x174   : > { %v1974_v1 = vadd.f32 %v1973_v55, %v1913_v59 }
 0x175   : > { %1948 = vadd.xlane.f32.xlu0 %v1947_v19 }
 0x176   : > { %1957 = vadd.xlane.f32.xlu1 %v1956_v11 }
 0x179   : > { %1685 = vadd.xlane.f32.xlu0 %v1684_v43 }
 0x17a   : > { %1694 = vadd.xlane.f32.xlu1 %v1693_v5 }
 0x17d   : > { %1966 = vadd.xlane.f32.xlu0 %v1965_v40 }
 0x17e   : > { %1975 = vadd.xlane.f32.xlu1 %v1974_v1 }
 0x17f   : > { %2631 = shalt.err (!%p2628_p5)
}
 0x180   : > { %s2632_s24 = scalar_lea.hbm %s3682_s16, 2048  ;;  %s2636_s28 = scalar_lea.hbm %s3824_s6, 4096 }
 0x181   : > { %p2633_p6 = scmp.ne.s32.totalorder %s3682_s16, %s2632_s24  ;;  %p2637_p10 = scmp.lt.u32.totalorder %s3682_s16, %s3824_s6 }
 0x182   : > { %p2638_p11 = scmp.lt.u32.totalorder %s2636_s28, %s2632_s24  ;;  %p2640_p13 = scmp.lt.u32.totalorder %s2632_s24, %s3682_s16 }
 0x183   : > { %p2634_p7 = pnand %p2633_p6, %p2794_p4 }
 0x184   : > { %p2639_p12 = por %p2638_p11, %p2637_p10 }
 0x185   : > { %p2635_p9 = pneg %p2634_p7 }
 0x186   : > { %p2641_p0 = por %p2640_p13, %p2639_p12 }
 0x188   : > { %p2642_p1 = pnand %p2641_p0, %p2635_p9 }
 0x18a   : > { %2645 = shalt.err (!%p2642_p1)
}
 0x18b   : > { %s2701_s18 = smov 512   ;;  %s2702_s20 = smov 1024   ;;  %v1711_v34 = vld [vmem:[#allocation3] sm:$0xff]  ;;  %v1712_v58 = vld [vmem:[#allocation3 + $0x8] sm:$0xff]  ;;  %v1713_v6 = vld [vmem:[#allocation3 + $0x10] sm:$0xff] }
 0x18c   : > { %s2703_s25 = smov 32   ;;  %s3714_s24 = smul.u32 56, %s2813_s23  ;;  %v1714_v16 = vld [vmem:[#allocation3 + $0x18] sm:$0xff]  ;;  %v1715_v2 = vld [vmem:[#allocation3 + $0x20] sm:$0xff]  ;;  %v1716_v8 = vld [vmem:[#allocation3 + $0x28] sm:$0xff] }
 0x18d   : > { %2548 = dma.vmem_to_hbm [thread:$0]  (%p2794_p4), %s3684_s27, 2048, %s3682_s16, %s3688_s15, %s2701_s18, %s2702_s20, %s2703_s25   ;;  %v1717_v22 = vld [vmem:[#allocation3 + $0x30] sm:$0xff]  ;;  %v1851_v47 = vld [vmem:[#allocation4] sm:$0xff]  ;;  %v1570_v50 = vld [vmem:[#allocation2] sm:$0xff] }
 0x18e   : > { %s3721_s28 = scalar_lea.vmem %s3826_s8, %s3714_s24  ;;  %v1571_v41 = vld [vmem:[#allocation2 + $0x8] sm:$0xff]  ;;  %v1852_v20 = vld [vmem:[#allocation4 + $0x8] sm:$0xff]  ;;  %s3748_s27 = scalar_lea.vmem %s3827_s9, %s3714_s24  ;;  %v1853_v29 = vld [vmem:[#allocation4 + $0x10] sm:$0xff] }
 0x18f   : > { %s3755_s29 = scalar_lea.vmem %s3825_s7, %s3714_s24  ;;  %v1572_v15 = vld [vmem:[#allocation2 + $0x10] sm:$0xff]  ;;  %v1573_v27 = vld [vmem:[#allocation2 + $0x18] sm:$0xff]  ;;  %v1574_v21 = vld [vmem:[#allocation2 + $0x20] sm:$0xff] }
 0x190   : > { %v1854_v11 = vld [vmem:[#allocation4 + $0x18] sm:$0xff]  ;;  %v1855_v43 = vld [vmem:[#allocation4 + $0x20] sm:$0xff] }
 0x1ab   : > { %v1782_v7 = vpop.xlane.xlu0 %1781 }
 0x1ac   : > { %v1837_v62 = vadd.f32 %v1782_v7, %v1711_v34  ;;  %v1575_v34 = vld [vmem:[#allocation2 + $0x28] sm:$0xff]  ;;  %v1576_v7 = vld [vmem:[#allocation2 + $0x30] sm:$0xff] }
 0x1ae   : > { %1844 = vst.msk [vmem:[#allocation3] sm:$0xff] %vm494_vm2, %v1837_v62 }
 0x1af   : > { %v1791_v63 = vpop.xlane.xlu1 %1790 }
 0x1b0   : > { %v1838_v32 = vadd.f32 %v1791_v63, %v1712_v58 }
 0x1b2   : > { %1845 = vst.msk [vmem:[#allocation3 + $0x8] sm:$0xff] %vm494_vm2, %v1838_v32 }
 0x1b4   : > { %v1800_v61 = vpop.xlane.xlu0 %1799 }
 0x1b5   : > { %v1839_v14 = vadd.f32 %v1800_v61, %v1713_v6  ;;  %v2120_v24 = vld [vmem:[#allocation3] sm:$0xff] }
 0x1b6   : > { %2127 = vst.msk [vmem:[%s3721_s28] sm:$0xff] %vm494_vm2, %v2120_v24  ;;  %v1856_v61 = vld [vmem:[#allocation4 + $0x28] sm:$0xff]  ;;  %v1857_v24 = vld [vmem:[#allocation4 + $0x30] sm:$0xff] }
 0x1b7   : > { %1846 = vst.msk [vmem:[#allocation3 + $0x10] sm:$0xff] %vm494_vm2, %v1839_v14  ;;  %v1809_v17 = vpop.xlane.xlu1 %1808 }
 0x1b8   : > { %v1840_v46 = vadd.f32 %v1809_v17, %v1714_v16 }
 0x1b9   : > { %v2121_v4 = vld [vmem:[#allocation3 + $0x8] sm:$0xff] }
 0x1ba   : > { %2128 = vst.msk [vmem:[%s3721_s28 + $0x8] sm:$0xff] %vm494_vm2, %v2121_v4  ;;  %1847 = vst.msk [vmem:[#allocation3 + $0x18] sm:$0xff] %vm494_vm2, %v1840_v46 }
 0x1bb   : > { %v1818_v36 = vpop.xlane.xlu0 %1817 }
 0x1bc   : > { %v1841_v60 = vadd.f32 %v1818_v36, %v1715_v2 }
 0x1be   : > { %v2122_v0 = vld [vmem:[#allocation3 + $0x10] sm:$0xff]  ;;  %1848 = vst.msk [vmem:[#allocation3 + $0x20] sm:$0xff] %vm494_vm2, %v1841_v60 }
 0x1bf   : > { %2129 = vst.msk [vmem:[%s3721_s28 + $0x10] sm:$0xff] %vm494_vm2, %v2122_v0 }
 0x1c1   : > { %v2123_v31 = vld [vmem:[#allocation3 + $0x18] sm:$0xff]  ;;  %v1827_v49 = vpop.xlane.xlu1 %1826 }
 0x1c2   : > { %2130 = vst.msk [vmem:[%s3721_s28 + $0x18] sm:$0xff] %vm494_vm2, %v2123_v31  ;;  %v1842_v30 = vadd.f32 %v1827_v49, %v1716_v8 }
 0x1c4   : > { %1849 = vst.msk [vmem:[#allocation3 + $0x28] sm:$0xff] %vm494_vm2, %v1842_v30 }
 0x1c5   : > { %v2124_v57 = vld [vmem:[#allocation3 + $0x20] sm:$0xff] }
 0x1c6   : > { %2131 = vst.msk [vmem:[%s3721_s28 + $0x20] sm:$0xff] %vm494_vm2, %v2124_v57 }
 0x1cb   : > { %v2125_v10 = vld [vmem:[#allocation3 + $0x28] sm:$0xff]  ;;  %v1836_v44 = vpop.xlane.xlu0 %1835 }
 0x1cc   : > { %2132 = vst.msk [vmem:[%s3721_s28 + $0x28] sm:$0xff] %vm494_vm2, %v2125_v10  ;;  %v1843_v25 = vadd.f32 %v1836_v44, %v1717_v22 }
 0x1ce   : > { %1850 = vst.msk [vmem:[#allocation3 + $0x30] sm:$0xff] %vm494_vm2, %v1843_v25 }
 0x1d5   : > { %v2126_v9 = vld [vmem:[#allocation3 + $0x30] sm:$0xff] }
 0x1d6   : > { %2133 = vst.msk [vmem:[%s3721_s28 + $0x30] sm:$0xff] %vm494_vm2, %v2126_v9 }
 0x1ee   : > { %v1922_v28 = vpop.xlane.xlu1 %1921 }
 0x1ef   : > { %v1977_v39 = vadd.f32 %v1922_v28, %v1851_v47 }
 0x1f0   : > { %v1641_v13 = vpop.xlane.xlu0 %1640 }
 0x1f1   : > { %1984 = vst.msk [vmem:[#allocation4] sm:$0xff] %vm494_vm2, %v1977_v39  ;;  %v1696_v35 = vadd.f32 %v1641_v13, %v1570_v50 }
 0x1f2   : > { %v1650_v23 = vpop.xlane.xlu1 %1649 }
 0x1f3   : > { %1704 = vst.msk [vmem:[#allocation2] sm:$0xff] %vm494_vm2, %v1696_v35  ;;  %v1697_v33 = vadd.f32 %v1650_v23, %v1571_v41 }
 0x1f5   : > { %v1931_v38 = vpop.xlane.xlu0 %1930  ;;  %1705 = vst.msk [vmem:[#allocation2 + $0x8] sm:$0xff] %vm494_vm2, %v1697_v33 }
 0x1f6   : > { %v1978_v45 = vadd.f32 %v1931_v38, %v1852_v20 }
 0x1f7   : > { %v1940_v37 = vpop.xlane.xlu1 %1939 }
 0x1f8   : > { %v2134_v53 = vld [vmem:[#allocation4] sm:$0xff]  ;;  %1985 = vst.msk [vmem:[#allocation4 + $0x8] sm:$0xff] %vm494_vm2, %v1978_v45  ;;  %v1979_v48 = vadd.f32 %v1940_v37, %v1853_v29 }
 0x1f9   : > { %2141 = vst.msk [vmem:[%s3748_s27] sm:$0xff] %vm494_vm2, %v2134_v53 }
 0x1fa   : > { %v2106_v52 = vld [vmem:[#allocation2] sm:$0xff]  ;;  %v1659_v54 = vpop.xlane.xlu0 %1658  ;;  %1986 = vst.msk [vmem:[#allocation4 + $0x10] sm:$0xff] %vm494_vm2, %v1979_v48 }
 0x1fb   : > { %2113 = vst.msk [vmem:[%s3755_s29] sm:$0xff] %vm494_vm2, %v2106_v52  ;;  %v1698_v42 = vadd.f32 %v1659_v54, %v1572_v15 }
 0x1fc   : > { %v2107_v51 = vld [vmem:[#allocation2 + $0x8] sm:$0xff] }
 0x1fd   : > { %1706 = vst.msk [vmem:[#allocation2 + $0x10] sm:$0xff] %vm494_vm2, %v1698_v42  ;;  %2114 = vst.msk [vmem:[%s3755_s29 + $0x8] sm:$0xff] %vm494_vm2, %v2107_v51 }
 0x1fe   : > { %v1668_v3 = vpop.xlane.xlu0 %1667 }
 0x1ff   : > { %v2135_v18 = vld [vmem:[#allocation4 + $0x8] sm:$0xff]  ;;  %v1699_v56 = vadd.f32 %v1668_v3, %v1573_v27  ;;  %v1677_v12 = vpop.xlane.xlu1 %1676 }
 0x200   : > { %2142 = vst.msk [vmem:[%s3748_s27 + $0x8] sm:$0xff] %vm494_vm2, %v2135_v18  ;;  %v1700_v19 = vadd.f32 %v1677_v12, %v1574_v21 }
 0x201   : > { %1707 = vst.msk [vmem:[#allocation2 + $0x18] sm:$0xff] %vm494_vm2, %v1699_v56  ;;  %v2136_v40 = vld [vmem:[#allocation4 + $0x10] sm:$0xff] }
 0x202   : > { %1708 = vst.msk [vmem:[#allocation2 + $0x20] sm:$0xff] %vm494_vm2, %v1700_v19  ;;  %v1949_v59 = vpop.xlane.xlu0 %1948  ;;  %2143 = vst.msk [vmem:[%s3748_s27 + $0x10] sm:$0xff] %vm494_vm2, %v2136_v40 }
 0x203   : > { %v1980_v26 = vadd.f32 %v1949_v59, %v1854_v11  ;;  %v1958_v55 = vpop.xlane.xlu1 %1957 }
 0x204   : > { %v2108_v5 = vld [vmem:[#allocation2 + $0x10] sm:$0xff]  ;;  %v1981_v1 = vadd.f32 %v1958_v55, %v1855_v43 }
 0x205   : > { %2115 = vst.msk [vmem:[%s3755_s29 + $0x10] sm:$0xff] %vm494_vm2, %v2108_v5  ;;  %1987 = vst.msk [vmem:[#allocation4 + $0x18] sm:$0xff] %vm494_vm2, %v1980_v26 }
 0x206   : > { %1988 = vst.msk [vmem:[#allocation4 + $0x20] sm:$0xff] %vm494_vm2, %v1981_v1  ;;  %v1686_v62 = vpop.xlane.xlu0 %1685 }
 0x207   : > { %v1701_v58 = vadd.f32 %v1686_v62, %v1575_v34  ;;  %v1695_v63 = vpop.xlane.xlu1 %1694 }
 0x208   : > { %v2109_v32 = vld [vmem:[#allocation2 + $0x18] sm:$0xff]  ;;  %v1702_v6 = vadd.f32 %v1695_v63, %v1576_v7 }
 0x209   : > { %2116 = vst.msk [vmem:[%s3755_s29 + $0x18] sm:$0xff] %vm494_vm2, %v2109_v32  ;;  %v2110_v14 = vld [vmem:[#allocation2 + $0x20] sm:$0xff]  ;;  %1709 = vst.msk [vmem:[#allocation2 + $0x28] sm:$0xff] %vm494_vm2, %v1701_v58 }
 0x20a   : > { %2117 = vst.msk [vmem:[%s3755_s29 + $0x20] sm:$0xff] %vm494_vm2, %v2110_v14  ;;  %1710 = vst.msk [vmem:[#allocation2 + $0x30] sm:$0xff] %vm494_vm2, %v1702_v6  ;;  %v1967_v16 = vpop.xlane.xlu0 %1966 }
 0x20b   : > { %v1982_v17 = vadd.f32 %v1967_v16, %v1856_v61  ;;  %v1976_v46 = vpop.xlane.xlu1 %1975 }
 0x20c   : > { %v2137_v4 = vld [vmem:[#allocation4 + $0x18] sm:$0xff]  ;;  %v1983_v2 = vadd.f32 %v1976_v46, %v1857_v24 }
 0x20d   : > { %2144 = vst.msk [vmem:[%s3748_s27 + $0x18] sm:$0xff] %vm494_vm2, %v2137_v4  ;;  %v2138_v36 = vld [vmem:[#allocation4 + $0x20] sm:$0xff]  ;;  %1989 = vst.msk [vmem:[#allocation4 + $0x28] sm:$0xff] %vm494_vm2, %v1982_v17 }
 0x20e   : > { %2145 = vst.msk [vmem:[%s3748_s27 + $0x20] sm:$0xff] %vm494_vm2, %v2138_v36  ;;  %1990 = vst.msk [vmem:[#allocation4 + $0x30] sm:$0xff] %vm494_vm2, %v1983_v2 }
 0x210   : > { %v2111_v60 = vld [vmem:[#allocation2 + $0x28] sm:$0xff] }
 0x211   : > { %2118 = vst.msk [vmem:[%s3755_s29 + $0x28] sm:$0xff] %vm494_vm2, %v2111_v60  ;;  %v2112_v0 = vld [vmem:[#allocation2 + $0x30] sm:$0xff] }
 0x212   : > { %2119 = vst.msk [vmem:[%s3755_s29 + $0x30] sm:$0xff] %vm494_vm2, %v2112_v0 }
 0x214   : > { %v2139_v8 = vld [vmem:[#allocation4 + $0x28] sm:$0xff] }
 0x215   : > { %2146 = vst.msk [vmem:[%s3748_s27 + $0x28] sm:$0xff] %vm494_vm2, %v2139_v8  ;;  %v2140_v31 = vld [vmem:[#allocation4 + $0x30] sm:$0xff] }
 0x216   : > { %2147 = vst.msk [vmem:[%s3748_s27 + $0x30] sm:$0xff] %vm494_vm2, %v2140_v31 }
 0x217 PF: > { %p2554_p4 = scmp.ge.s32.totalorder %s2696_s14, 2  ;;  %s2215_s12 = sand.u32 1, %s2676_s30  }
 0x218   : > { %s2216_s18 = scalar_lea.sflag [#allocation6], %s2215_s12 }
 0x219   : > { %p2551_p2 = pnand %p2554_p4, %p2801_p8 }
 0x21b   : > { %2671 = dma.done.wait (!%p2551_p2), %s2216_s18, 2048  }
 0x21c   : > { %2673 = vsyncadd (!%p2551_p2), %s2216_s18, 4294965248  ;;  %s23_s14 = sadd.s32 1, %s2696_s14   ;;  %s3889_s20 = sld [smem:[#allocation8_spill]] }
 0x21d   : > { %p20_p3 = scmp.ge.s32.totalorder %s23_s14, 4   ;;  %s3890_s30 = smov %s2680_s10 }
 0x21e   : > { %s3891_s10 = smov %s2684_s11  ;;  %s3892_s11 = smov %s2807_s22 }
 0x21f   : > { %s3893_s12 = smov %s2692_s13  ;;  %22 = sbr.rel (!%p20_p3) target bundleno = 4 (0x4), region = 126 }
 0x222   : > { %s3894_s13 = smov %s3889_s20 }
 0x226   :  { %2257 = vsyncpa [#allocation6], 1 }
 0x227   :  { %2259 = vsyncpa [#allocation6 + $0x1], 1 }

</bundles_post_ra>
